<compile_context>
chip_gen: v6e
topology: v6e:2x2x1
jax: 0.10.0
libtpu: 0.0.40
codegen_flags: <defaults>
</compile_context>

<pallas_src>
import jax
import jax.numpy as jnp
from jax.experimental import pallas as pl
from jax.experimental.pallas import tpu as pltpu

F32 = jnp.float32
BN_EPS = 1e-5


def _cparams():
    return pltpu.CompilerParams(
        dimension_semantics=("arbitrary",),      # single-step grid (see TODO on M tiling)
        vmem_limit_bytes=32 * 1024 * 1024,
    )


def _full_spec(shape):
    """Whole-array VMEM block for a single-step grid."""
    shape = tuple(int(s) for s in shape)
    return pl.BlockSpec(shape, lambda i: (0,) * len(shape))


# ----------------------------- Pallas kernels ------------------------------
def _stem_lateral_kernel(taps_ref, ws_ref, bs_ref, wl_ref, bl_ref, stem_ref, lat_ref):
    """Fused stem 3x3/s2 conv (+bias+ReLU) and its lateral 1x1 conv — two MXU matmuls.

    taps_ref: (K, M)      K = 9*Cin (zero-padded to a multiple of 8), M = B*Ho*Wo
    ws_ref:   (Cout, K)   bs_ref: (Cout, 1)
    wl_ref:   (P, Cout)   bl_ref: (P, 1)
    stem_ref: (Cout, M)   lat_ref: (P, M)
    """
    stem = jnp.dot(ws_ref[...], taps_ref[...], preferred_element_type=jnp.float32)
    stem = jnp.maximum(stem + bs_ref[...], 0.0)
    stem_ref[...] = stem.astype(stem_ref.dtype)
    lat = jnp.dot(wl_ref[...], stem, preferred_element_type=jnp.float32) + bl_ref[...]
    lat_ref[...] = lat.astype(lat_ref.dtype)


def _downsample_kernel(taps_ref, dww_ref, pww_ref, shift_ref, o_ref):
    """One fused downsample pyramid stage (both branches + channel concat).

    branch 0: [F.pad-if->2 + MaxPool2d(2)] -> 1x1 (P->P/2) -> BN -> ReLU  -> rows [:P/2]
    branch 1: depthwise 3x3 s2 p1 -> 1x1 (P->P/2) -> BN -> ReLU           -> rows [P/2:]

    Both branches read the SAME 9 stride-2 tap planes: the 2x2 pool window is exactly taps
    {4, 5, 7, 8} (zero border of the dw padding == the zero pad torch adds for odd sizes).

    taps_ref:  (9, P, M)   M = B*Ho*Wo
    dww_ref:   (P, 9)      depthwise weights, column t = tap 3*i+j
    pww_ref:   (P, 2P)     block-diagonal [pw0*bn_s | 0 ; 0 | pw1*bn_s]
    shift_ref: (P, 1)      fused BN shift per output channel
    o_ref:     (P, M)      concatenated output slab
    """
    pooled = jnp.maximum(jnp.maximum(taps_ref[4], taps_ref[5]),
                         jnp.maximum(taps_ref[7], taps_ref[8]))
    dwout = dww_ref[:, 0:1] * taps_ref[0]
    for t in range(1, 9):                       # 9 channel-vectorized FMAs on (P, M)
        dwout = dwout + dww_ref[:, t:t + 1] * taps_ref[t]
    x = jnp.concatenate([pooled, dwout], axis=0)            # (2P, M)
    y = jnp.dot(pww_ref[...], x, preferred_element_type=jnp.float32) + shift_ref[...]
    o_ref[...] = jnp.maximum(y, 0.0).astype(o_ref.dtype)


def _up_kernel(taps_ref, lat_ref, dww_ref, shift_ref, o_ref):
    """One fused top-down stage: depthwise 3x3 s1 p1 (on pre-upsampled input) -> BN -> ReLU
    -> + lateral feature.

    taps_ref: (9, P, M)  lat_ref: (P, M)  dww_ref: (P, 9)  shift_ref: (P, 1)  o_ref: (P, M)
    """
    acc = dww_ref[:, 0:1] * taps_ref[0]
    for t in range(1, 9):
        acc = acc + dww_ref[:, t:t + 1] * taps_ref[t]
    out = jnp.maximum(acc + shift_ref[...], 0.0) + lat_ref[...]
    o_ref[...] = out.astype(o_ref.dtype)


# ------------------------------- JAX glue -----------------------------------
def _taps_s2(x):
    """9 stride-2 / pad-1 tap planes of a channel-major tensor.

    x: (C, B, H, W), H and W even  ->  (9, C, B, H//2, W//2); tap t = 3*i + j reads the
    1-padded input at (2*oh + i, 2*ow + j).
    """
    C, B, H, W = x.shape
    assert H % 2 == 0 and W % 2 == 0, "stride-2 paths expect even spatial dims"
    Ho, Wo = H // 2, W // 2
    xp = jnp.pad(x, ((0, 0), (0, 0), (1, 1), (1, 1)))
    taps = [xp[:, :, i:i + 2 * Ho:2, j:j + 2 * Wo:2]
            for i in range(3) for j in range(3)]
    return jnp.stack(taps, axis=0)


def _taps_s1(x):
    """9 stride-1 / pad-1 tap planes: (C, B, H, W) -> (9, C, B, H, W)."""
    C, B, H, W = x.shape
    xp = jnp.pad(x, ((0, 0), (0, 0), (1, 1), (1, 1)))
    taps = [xp[:, :, i:i + H, j:j + W] for i in range(3) for j in range(3)]
    return jnp.stack(taps, axis=0)


def _nearest_upsample(x, H, W):
    """F.interpolate(mode='nearest') to (H, W) on a channel-major (P, B, h, w) tensor."""
    _, _, h, w = x.shape
    iy = (jnp.arange(H) * h) // H
    ix = (jnp.arange(W) * w) // W
    return x[:, :, iy[:, None], ix[None, :]]


def _pad_axis(a, axis, mult):
    """Zero-pad one axis up to a multiple of `mult` (for MXU-friendly contraction dims)."""
    rem = (-a.shape[axis]) % mult
    if rem == 0:
        return a
    pads = [(0, 0)] * a.ndim
    pads[axis] = (0, rem)
    return jnp.pad(a, pads)


def _bn_fold(bn):
    """Eval-mode BN folded to per-channel (scale, shift)."""
    scale = bn['gamma'] / jnp.sqrt(bn['var'] + BN_EPS)
    shift = bn['beta'] - bn['mean'] * scale
    return scale, shift


# ------------------------------ parameters ----------------------------------
def _xavier(key, shape, fan_in, fan_out):
    std = (2.0 / (fan_in + fan_out)) ** 0.5
    return (std * jax.random.normal(key, shape)).astype(F32)


def _bn_init(c):
    return dict(gamma=jnp.ones((c,), F32), beta=jnp.zeros((c,), F32),
                mean=jnp.zeros((c,), F32), var=jnp.ones((c,), F32))


def init_params(key, pyramid_channels=8):
    """Shapes follow DepthwiseFeaturePyramid.__init__ with pyramid_layers=4,
    out_layers=[1, 3], and a synthetic 2-layer base (channels 3 -> 8 -> 16)."""
    P = pyramid_channels
    Ph = P // 2
    keys = iter(jax.random.split(key, 32))
    base_defs = [(3, 8), (8, 16)]
    base = []
    for cin, cout in base_defs:
        # stem 3x3 weight as (Cout, 9*Cin); column index = t*Cin + ci with t = 3*i + j
        w = _xavier(next(keys), (cout, 9 * cin), fan_in=9 * cin, fan_out=9 * cout)
        base.append(dict(w=w, b=jnp.zeros((cout,), F32)))
    lateral = [dict(w=_xavier(next(keys), (P, cout), cout, P),   # 1x1: (P, Csrc)
                    b=jnp.zeros((P,), F32))                      # nn.init.zeros_ on bias
               for _, cout in base_defs]
    downsample = []
    for _ in range(2):                                  # pyramid_layers - len(out_layers)
        downsample.append(dict(
            dw_w=_xavier(next(keys), (P, 9), 9, 9),     # depthwise 3x3 s2, [c, t]
            pw0=_xavier(next(keys), (Ph, P), P, Ph),    # 1x1 head after the max-pool
            pw1=_xavier(next(keys), (Ph, P), P, Ph),    # 1x1 head after the depthwise conv
            bn=_bn_init(P)))                            # BN over the concatenated P channels
    up_conv = [dict(w=_xavier(next(keys), (P, 9), 9, 9), bn=_bn_init(P))
               for _ in range(3)]                       # pyramid_layers - 1
    return dict(base=base, lateral=lateral, downsample=downsample, up_conv=up_conv)


# -------------------------------- forward -----------------------------------
def forward(params, x_nchw):
    P = params['lateral'][0]['w'].shape[0]
    Ph = P // 2
    B = x_nchw.shape[0]

    # channel-major internal layout: (C, B, H, W) so M = B*H*W is lane-dense everywhere.
    x = jnp.transpose(x_nchw.astype(F32), (1, 0, 2, 3))

    # ---- base stem + fused pyramid_lateral 1x1 (one pallas_call per layer) ----
    feats = []                                   # list of (P, B, h, w)
    f = x
    for stem_p, lat_p in zip(params['base'], params['lateral']):
        C, _, H, W = f.shape
        Ho, Wo = H // 2, W // 2
        M = B * Ho * Wo
        taps = _taps_s2(f).reshape(9 * C, M)     # lane-dense, row = t*C + c
        taps = _pad_axis(taps, 0, 8)             # MXU-friendly contraction dim
        w_stem = _pad_axis(stem_p['w'], 1, 8)
        Cout = w_stem.shape[0]
        stem_flat, lat_flat = pl.pallas_call(
            _stem_lateral_kernel,
            out_shape=(jax.ShapeDtypeStruct((Cout, M), F32),
                       jax.ShapeDtypeStruct((P, M), F32)),
            grid=(1,),
            in_specs=[_full_spec(taps.shape), _full_spec(w_stem.shape),
                      _full_spec((Cout, 1)), _full_spec((P, Cout)),
                      _full_spec((P, 1))],
            out_specs=(_full_spec((Cout, M)), _full_spec((P, M))),
            compiler_params=_cparams(),
        )(taps, w_stem, stem_p['b'].reshape(Cout, 1),
          lat_p['w'], lat_p['b'].reshape(P, 1))
        f = stem_flat.reshape(Cout, B, Ho, Wo)
        feats.append(lat_flat.reshape(P, B, Ho, Wo))

    # ---- downsample stages (one fused kernel each) ----
    for ds in params['downsample']:
        prev = feats[-1]
        _, _, H, W = prev.shape
        Ho, Wo = H // 2, W // 2
        M = B * Ho * Wo
        taps = _taps_s2(prev).reshape(9, P, M)
        scale, shift = _bn_fold(ds['bn'])
        z = jnp.zeros((Ph, P), F32)
        wcat = jnp.concatenate(                  # block-diagonal, BN scale folded in
            [jnp.concatenate([ds['pw0'] * scale[:Ph, None], z], axis=1),
             jnp.concatenate([z, ds['pw1'] * scale[Ph:, None]], axis=1)], axis=0)
        out = pl.pallas_call(
            _downsample_kernel,
            out_shape=jax.ShapeDtypeStruct((P, M), F32),
            grid=(1,),
            in_specs=[_full_spec((9, P, M)), _full_spec((P, 9)),
                      _full_spec((P, 2 * P)), _full_spec((P, 1))],
            out_specs=_full_spec((P, M)),
            compiler_params=_cparams(),
        )(taps, ds['dw_w'], wcat, shift.reshape(P, 1))
        feats.append(out.reshape(P, B, Ho, Wo))

    # ---- top-down path: upsample -> depthwise Conv2dBn -> + lateral (one kernel each) ----
    output = [feats[-1]]
    for i in reversed(range(len(feats) - 1)):
        lat = feats[i]
        _, _, H, W = lat.shape
        M = B * H * W
        up = _nearest_upsample(output[-1], H, W)
        taps = _taps_s1(up).reshape(9, P, M)
        upc = params['up_conv'][i]
        scale, shift = _bn_fold(upc['bn'])
        dw_fused = upc['w'] * scale[:, None]     # BN scale folded into the dw weights
        out = pl.pallas_call(
            _up_kernel,
            out_shape=jax.ShapeDtypeStruct((P, M), F32),
            grid=(1,),
            in_specs=[_full_spec((9, P, M)), _full_spec((P, M)),
                      _full_spec((P, 9)), _full_spec((P, 1))],
            out_specs=_full_spec((P, M)),
            compiler_params=_cparams(),
        )(taps, lat.reshape(P, M), dw_fused, shift.reshape(P, 1))
        output.append(out.reshape(P, B, H, W))
    output = list(reversed(output))

    # back to the PyTorch-facing NCHW layout only at the boundary.
    outputs_nchw = [jnp.transpose(o, (1, 0, 2, 3)) for o in output]
    return outputs_nchw, outputs_nchw[-1]


if __name__ == "__main__":
    key = jax.random.PRNGKey(0)
    pkey, xkey = jax.random.split(key)
    params = init_params(pkey, pyramid_channels=8)
    x = jax.random.normal(xkey, (2, 3, 16, 16), dtype=F32)   # NCHW, like PyTorch
    fwd = jax.jit(forward)
    outputs, last = fwd(params, x)
    jax.block_until_ready(last)
    expected = [(2, 8, 8, 8), (2, 8, 4, 4), (2, 8, 2, 2), (2, 8, 1, 1)]
    got = [tuple(map(int, o.shape)) for o in outputs]
    assert got == expected, got
    assert tuple(last.shape) == expected[-1]
    assert all(bool(jnp.all(jnp.isfinite(o))) for o in outputs)
    print("KERNEL_OK")
</pallas_src>

<mosaic_0001>
module attributes {stable_mosaic.version = 11 : i64} {
  func.func @_stem_lateral_kernel(%arg0: i32, %arg1: memref<32x128xf32, #tpu.memory_space<vmem>>, %arg2: memref<8x32xf32, #tpu.memory_space<vmem>>, %arg3: memref<8x1xf32, #tpu.memory_space<vmem>>, %arg4: memref<8x8xf32, #tpu.memory_space<vmem>>, %arg5: memref<8x1xf32, #tpu.memory_space<vmem>>, %arg6: memref<8x128xf32, #tpu.memory_space<vmem>>, %arg7: memref<8x128xf32, #tpu.memory_space<vmem>>) attributes {dimension_semantics = [#tpu.dimension_semantics<arbitrary>], iteration_bounds = array<i64: 1>, scalar_prefetch = 0 : i64, scratch_operands = 0 : i64, tpu.core_type = #tpu.core_type<tc>, window_params = [{pipeline_mode = #tpu.pipeline_mode<synchronous>, transform_indices = @transform_0, window_bounds = array<i64: 32, 128>}, {pipeline_mode = #tpu.pipeline_mode<synchronous>, transform_indices = @transform_1, window_bounds = array<i64: 8, 32>}, {pipeline_mode = #tpu.pipeline_mode<synchronous>, transform_indices = @transform_2, window_bounds = array<i64: 8, 1>}, {pipeline_mode = #tpu.pipeline_mode<synchronous>, transform_indices = @transform_3, window_bounds = array<i64: 8, 8>}, {pipeline_mode = #tpu.pipeline_mode<synchronous>, transform_indices = @transform_4, window_bounds = array<i64: 8, 1>}, {pipeline_mode = #tpu.pipeline_mode<synchronous>, transform_indices = @transform_5, window_bounds = array<i64: 8, 128>}, {pipeline_mode = #tpu.pipeline_mode<synchronous>, transform_indices = @transform_6, window_bounds = array<i64: 8, 128>}]} {
    %c0 = arith.constant 0 : index
    %c0_0 = arith.constant 0 : index
    %0 = vector.load %arg2[%c0, %c0_0] : memref<8x32xf32, #tpu.memory_space<vmem>>, vector<8x32xf32>
    %c0_1 = arith.constant 0 : index
    %c0_2 = arith.constant 0 : index
    %1 = vector.load %arg1[%c0_1, %c0_2] : memref<32x128xf32, #tpu.memory_space<vmem>>, vector<32x128xf32>
    %cst = arith.constant dense<0.000000e+00> : vector<8x128xf32>
    %2 = tpu.matmul %0, %1, %cst {dimension_numbers = #tpu.dot_dimension_numbers<[1], [0], [0], [1], [0, 0, 1, 1], [], []>} : vector<8x32xf32>, vector<32x128xf32>, vector<8x128xf32> -> vector<8x128xf32>
    %c0_3 = arith.constant 0 : index
    %c0_4 = arith.constant 0 : index
    %3 = vector.load %arg3[%c0_3, %c0_4] : memref<8x1xf32, #tpu.memory_space<vmem>>, vector<8x1xf32>
    %4 = vector.broadcast %3 : vector<8x1xf32> to vector<8x128xf32>
    %5 = arith.addf %2, %4 : vector<8x128xf32>
    %cst_5 = arith.constant 0.000000e+00 : f32
    %6 = vector.broadcast %cst_5 : f32 to vector<8x128xf32>
    %7 = arith.maximumf %5, %6 : vector<8x128xf32>
    %c0_6 = arith.constant 0 : index
    %c0_7 = arith.constant 0 : index
    %8 = vector.load %arg6[%c0_6, %c0_7] : memref<8x128xf32, #tpu.memory_space<vmem>>, vector<8x128xf32>
    tpu.vector_store %arg6[%c0_6, %c0_7], %7 {strides = array<i32>} : memref<8x128xf32, #tpu.memory_space<vmem>>, vector<8x128xf32>,
    %c0_8 = arith.constant 0 : index
    %c0_9 = arith.constant 0 : index
    %9 = vector.load %arg4[%c0_8, %c0_9] : memref<8x8xf32, #tpu.memory_space<vmem>>, vector<8x8xf32>
    %cst_10 = arith.constant dense<0.000000e+00> : vector<8x128xf32>
    %10 = tpu.matmul %9, %7, %cst_10 {dimension_numbers = #tpu.dot_dimension_numbers<[1], [0], [0], [1], [0, 0, 1, 1], [], []>} : vector<8x8xf32>, vector<8x128xf32>, vector<8x128xf32> -> vector<8x128xf32>
    %c0_11 = arith.constant 0 : index
    %c0_12 = arith.constant 0 : index
    %11 = vector.load %arg5[%c0_11, %c0_12] : memref<8x1xf32, #tpu.memory_space<vmem>>, vector<8x1xf32>
    %12 = vector.broadcast %11 : vector<8x1xf32> to vector<8x128xf32>
    %13 = arith.addf %10, %12 : vector<8x128xf32>
    %c0_13 = arith.constant 0 : index
    %c0_14 = arith.constant 0 : index
    %14 = vector.load %arg7[%c0_13, %c0_14] : memref<8x128xf32, #tpu.memory_space<vmem>>, vector<8x128xf32>
    tpu.vector_store %arg7[%c0_13, %c0_14], %13 {strides = array<i32>} : memref<8x128xf32, #tpu.memory_space<vmem>>, vector<8x128xf32>,
    return
  }
  func.func @transform_0(%arg0: i32) -> (i32, i32) {
    %c0_i32 = arith.constant 0 : i32
    %c0_i32_0 = arith.constant 0 : i32
    %c0_i32_1 = arith.constant 0 : i32
    return %c0_i32, %c0_i32_0 : i32, i32
  }
  func.func @transform_1(%arg0: i32) -> (i32, i32) {
    %c0_i32 = arith.constant 0 : i32
    %c0_i32_0 = arith.constant 0 : i32
    %c0_i32_1 = arith.constant 0 : i32
    return %c0_i32, %c0_i32_0 : i32, i32
  }
  func.func @transform_2(%arg0: i32) -> (i32, i32) {
    %c0_i32 = arith.constant 0 : i32
    %c0_i32_0 = arith.constant 0 : i32
    %c0_i32_1 = arith.constant 0 : i32
    return %c0_i32, %c0_i32_0 : i32, i32
  }
  func.func @transform_3(%arg0: i32) -> (i32, i32) {
    %c0_i32 = arith.constant 0 : i32
    %c0_i32_0 = arith.constant 0 : i32
    %c0_i32_1 = arith.constant 0 : i32
    return %c0_i32, %c0_i32_0 : i32, i32
  }
  func.func @transform_4(%arg0: i32) -> (i32, i32) {
    %c0_i32 = arith.constant 0 : i32
    %c0_i32_0 = arith.constant 0 : i32
    %c0_i32_1 = arith.constant 0 : i32
    return %c0_i32, %c0_i32_0 : i32, i32
  }
  func.func @transform_5(%arg0: i32) -> (i32, i32) {
    %c0_i32 = arith.constant 0 : i32
    %c0_i32_0 = arith.constant 0 : i32
    %c0_i32_1 = arith.constant 0 : i32
    return %c0_i32, %c0_i32_0 : i32, i32
  }
  func.func @transform_6(%arg0: i32) -> (i32, i32) {
    %c0_i32 = arith.constant 0 : i32
    %c0_i32_0 = arith.constant 0 : i32
    %c0_i32_1 = arith.constant 0 : i32
    return %c0_i32, %c0_i32_0 : i32, i32
  }
}

module attributes {stable_mosaic.version = 11 : i64} {
  func.func @_stem_lateral_kernel(%arg0: i32, %arg1: memref<72x32xf32, #tpu.memory_space<vmem>>, %arg2: memref<16x72xf32, #tpu.memory_space<vmem>>, %arg3: memref<16x1xf32, #tpu.memory_space<vmem>>, %arg4: memref<8x16xf32, #tpu.memory_space<vmem>>, %arg5: memref<8x1xf32, #tpu.memory_space<vmem>>, %arg6: memref<16x32xf32, #tpu.memory_space<vmem>>, %arg7: memref<8x32xf32, #tpu.memory_space<vmem>>) attributes {dimension_semantics = [#tpu.dimension_semantics<arbitrary>], iteration_bounds = array<i64: 1>, scalar_prefetch = 0 : i64, scratch_operands = 0 : i64, tpu.core_type = #tpu.core_type<tc>, window_params = [{pipeline_mode = #tpu.pipeline_mode<synchronous>, transform_indices = @transform_0, window_bounds = array<i64: 72, 32>}, {pipeline_mode = #tpu.pipeline_mode<synchronous>, transform_indices = @transform_1, window_bounds = array<i64: 16, 72>}, {pipeline_mode = #tpu.pipeline_mode<synchronous>, transform_indices = @transform_2, window_bounds = array<i64: 16, 1>}, {pipeline_mode = #tpu.pipeline_mode<synchronous>, transform_indices = @transform_3, window_bounds = array<i64: 8, 16>}, {pipeline_mode = #tpu.pipeline_mode<synchronous>, transform_indices = @transform_4, window_bounds = array<i64: 8, 1>}, {pipeline_mode = #tpu.pipeline_mode<synchronous>, transform_indices = @transform_5, window_bounds = array<i64: 16, 32>}, {pipeline_mode = #tpu.pipeline_mode<synchronous>, transform_indices = @transform_6, window_bounds = array<i64: 8, 32>}]} {
    %c0 = arith.constant 0 : index
    %c0_0 = arith.constant 0 : index
    %0 = vector.load %arg2[%c0, %c0_0] : memref<16x72xf32, #tpu.memory_space<vmem>>, vector<16x72xf32>
    %c0_1 = arith.constant 0 : index
    %c0_2 = arith.constant 0 : index
    %1 = vector.load %arg1[%c0_1, %c0_2] : memref<72x32xf32, #tpu.memory_space<vmem>>, vector<72x32xf32>
    %cst = arith.constant dense<0.000000e+00> : vector<16x32xf32>
    %2 = tpu.matmul %0, %1, %cst {dimension_numbers = #tpu.dot_dimension_numbers<[1], [0], [0], [1], [0, 0, 1, 1], [], []>} : vector<16x72xf32>, vector<72x32xf32>, vector<16x32xf32> -> vector<16x32xf32>
    %c0_3 = arith.constant 0 : index
    %c0_4 = arith.constant 0 : index
    %3 = vector.load %arg3[%c0_3, %c0_4] : memref<16x1xf32, #tpu.memory_space<vmem>>, vector<16x1xf32>
    %4 = vector.broadcast %3 : vector<16x1xf32> to vector<16x32xf32>
    %5 = arith.addf %2, %4 : vector<16x32xf32>
    %cst_5 = arith.constant 0.000000e+00 : f32
    %6 = vector.broadcast %cst_5 : f32 to vector<16x32xf32>
    %7 = arith.maximumf %5, %6 : vector<16x32xf32>
    %c0_6 = arith.constant 0 : index
    %c0_7 = arith.constant 0 : index
    %8 = vector.load %arg6[%c0_6, %c0_7] : memref<16x32xf32, #tpu.memory_space<vmem>>, vector<16x32xf32>
    tpu.vector_store %arg6[%c0_6, %c0_7], %7 {strides = array<i32>} : memref<16x32xf32, #tpu.memory_space<vmem>>, vector<16x32xf32>,
    %c0_8 = arith.constant 0 : index
    %c0_9 = arith.constant 0 : index
    %9 = vector.load %arg4[%c0_8, %c0_9] : memref<8x16xf32, #tpu.memory_space<vmem>>, vector<8x16xf32>
    %cst_10 = arith.constant dense<0.000000e+00> : vector<8x32xf32>
    %10 = tpu.matmul %9, %7, %cst_10 {dimension_numbers = #tpu.dot_dimension_numbers<[1], [0], [0], [1], [0, 0, 1, 1], [], []>} : vector<8x16xf32>, vector<16x32xf32>, vector<8x32xf32> -> vector<8x32xf32>
    %c0_11 = arith.constant 0 : index
    %c0_12 = arith.constant 0 : index
    %11 = vector.load %arg5[%c0_11, %c0_12] : memref<8x1xf32, #tpu.memory_space<vmem>>, vector<8x1xf32>
    %12 = vector.broadcast %11 : vector<8x1xf32> to vector<8x32xf32>
    %13 = arith.addf %10, %12 : vector<8x32xf32>
    %c0_13 = arith.constant 0 : index
    %c0_14 = arith.constant 0 : index
    %14 = vector.load %arg7[%c0_13, %c0_14] : memref<8x32xf32, #tpu.memory_space<vmem>>, vector<8x32xf32>
    tpu.vector_store %arg7[%c0_13, %c0_14], %13 {strides = array<i32>} : memref<8x32xf32, #tpu.memory_space<vmem>>, vector<8x32xf32>,
    return
  }
  func.func @transform_0(%arg0: i32) -> (i32, i32) {
    %c0_i32 = arith.constant 0 : i32
    %c0_i32_0 = arith.constant 0 : i32
    %c0_i32_1 = arith.constant 0 : i32
    return %c0_i32, %c0_i32_0 : i32, i32
  }
  func.func @transform_1(%arg0: i32) -> (i32, i32) {
    %c0_i32 = arith.constant 0 : i32
    %c0_i32_0 = arith.constant 0 : i32
    %c0_i32_1 = arith.constant 0 : i32
    return %c0_i32, %c0_i32_0 : i32, i32
  }
  func.func @transform_2(%arg0: i32) -> (i32, i32) {
    %c0_i32 = arith.constant 0 : i32
    %c0_i32_0 = arith.constant 0 : i32
    %c0_i32_1 = arith.constant 0 : i32
    return %c0_i32, %c0_i32_0 : i32, i32
  }
  func.func @transform_3(%arg0: i32) -> (i32, i32) {
    %c0_i32 = arith.constant 0 : i32
    %c0_i32_0 = arith.constant 0 : i32
    %c0_i32_1 = arith.constant 0 : i32
    return %c0_i32, %c0_i32_0 : i32, i32
  }
  func.func @transform_4(%arg0: i32) -> (i32, i32) {
    %c0_i32 = arith.constant 0 : i32
    %c0_i32_0 = arith.constant 0 : i32
    %c0_i32_1 = arith.constant 0 : i32
    return %c0_i32, %c0_i32_0 : i32, i32
  }
  func.func @transform_5(%arg0: i32) -> (i32, i32) {
    %c0_i32 = arith.constant 0 : i32
    %c0_i32_0 = arith.constant 0 : i32
    %c0_i32_1 = arith.constant 0 : i32
    return %c0_i32, %c0_i32_0 : i32, i32
  }
  func.func @transform_6(%arg0: i32) -> (i32, i32) {
    %c0_i32 = arith.constant 0 : i32
    %c0_i32_0 = arith.constant 0 : i32
    %c0_i32_1 = arith.constant 0 : i32
    return %c0_i32, %c0_i32_0 : i32, i32
  }
}

module attributes {stable_mosaic.version = 11 : i64} {
  func.func @_downsample_kernel(%arg0: i32, %arg1: memref<9x8x8xf32, #tpu.memory_space<vmem>>, %arg2: memref<8x9xf32, #tpu.memory_space<vmem>>, %arg3: memref<8x16xf32, #tpu.memory_space<vmem>>, %arg4: memref<8x1xf32, #tpu.memory_space<vmem>>, %arg5: memref<8x8xf32, #tpu.memory_space<vmem>>) attributes {dimension_semantics = [#tpu.dimension_semantics<arbitrary>], iteration_bounds = array<i64: 1>, scalar_prefetch = 0 : i64, scratch_operands = 0 : i64, tpu.core_type = #tpu.core_type<tc>, window_params = [{pipeline_mode = #tpu.pipeline_mode<synchronous>, transform_indices = @transform_0, window_bounds = array<i64: 9, 8, 8>}, {pipeline_mode = #tpu.pipeline_mode<synchronous>, transform_indices = @transform_1, window_bounds = array<i64: 8, 9>}, {pipeline_mode = #tpu.pipeline_mode<synchronous>, transform_indices = @transform_2, window_bounds = array<i64: 8, 16>}, {pipeline_mode = #tpu.pipeline_mode<synchronous>, transform_indices = @transform_3, window_bounds = array<i64: 8, 1>}, {pipeline_mode = #tpu.pipeline_mode<synchronous>, transform_indices = @transform_4, window_bounds = array<i64: 8, 8>}]} {
    %c4 = arith.constant 4 : index
    %c0 = arith.constant 0 : index
    %c0_0 = arith.constant 0 : index
    %0 = vector.load %arg1[%c4, %c0, %c0_0] : memref<9x8x8xf32, #tpu.memory_space<vmem>>, vector<1x8x8xf32>
    %1 = vector.shape_cast %0 : vector<1x8x8xf32> to vector<8x8xf32>
    %c5 = arith.constant 5 : index
    %c0_1 = arith.constant 0 : index
    %c0_2 = arith.constant 0 : index
    %2 = vector.load %arg1[%c5, %c0_1, %c0_2] : memref<9x8x8xf32, #tpu.memory_space<vmem>>, vector<1x8x8xf32>
    %3 = vector.shape_cast %2 : vector<1x8x8xf32> to vector<8x8xf32>
    %4 = arith.maximumf %1, %3 : vector<8x8xf32>
    %c7 = arith.constant 7 : index
    %c0_3 = arith.constant 0 : index
    %c0_4 = arith.constant 0 : index
    %5 = vector.load %arg1[%c7, %c0_3, %c0_4] : memref<9x8x8xf32, #tpu.memory_space<vmem>>, vector<1x8x8xf32>
    %6 = vector.shape_cast %5 : vector<1x8x8xf32> to vector<8x8xf32>
    %c8 = arith.constant 8 : index
    %c0_5 = arith.constant 0 : index
    %c0_6 = arith.constant 0 : index
    %7 = vector.load %arg1[%c8, %c0_5, %c0_6] : memref<9x8x8xf32, #tpu.memory_space<vmem>>, vector<1x8x8xf32>
    %8 = vector.shape_cast %7 : vector<1x8x8xf32> to vector<8x8xf32>
    %9 = arith.maximumf %6, %8 : vector<8x8xf32>
    %10 = arith.maximumf %4, %9 : vector<8x8xf32>
    %c0_7 = arith.constant 0 : index
    %c0_8 = arith.constant 0 : index
    %11 = vector.load %arg2[%c0_7, %c0_8] : memref<8x9xf32, #tpu.memory_space<vmem>>, vector<8x1xf32>
    %c0_9 = arith.constant 0 : index
    %c0_10 = arith.constant 0 : index
    %c0_11 = arith.constant 0 : index
    %12 = vector.load %arg1[%c0_9, %c0_10, %c0_11] : memref<9x8x8xf32, #tpu.memory_space<vmem>>, vector<1x8x8xf32>
    %13 = vector.shape_cast %12 : vector<1x8x8xf32> to vector<8x8xf32>
    %14 = vector.broadcast %11 : vector<8x1xf32> to vector<8x8xf32>
    %15 = arith.mulf %14, %13 : vector<8x8xf32>
    %c0_12 = arith.constant 0 : index
    %c1 = arith.constant 1 : index
    %16 = vector.load %arg2[%c0_12, %c1] : memref<8x9xf32, #tpu.memory_space<vmem>>, vector<8x1xf32>
    %c1_13 = arith.constant 1 : index
    %c0_14 = arith.constant 0 : index
    %c0_15 = arith.constant 0 : index
    %17 = vector.load %arg1[%c1_13, %c0_14, %c0_15] : memref<9x8x8xf32, #tpu.memory_space<vmem>>, vector<1x8x8xf32>
    %18 = vector.shape_cast %17 : vector<1x8x8xf32> to vector<8x8xf32>
    %19 = vector.broadcast %16 : vector<8x1xf32> to vector<8x8xf32>
    %20 = arith.mulf %19, %18 : vector<8x8xf32>
    %21 = arith.addf %15, %20 : vector<8x8xf32>
    %c0_16 = arith.constant 0 : index
    %c2 = arith.constant 2 : index
    %22 = vector.load %arg2[%c0_16, %c2] : memref<8x9xf32, #tpu.memory_space<vmem>>, vector<8x1xf32>
    %c2_17 = arith.constant 2 : index
    %c0_18 = arith.constant 0 : index
    %c0_19 = arith.constant 0 : index
    %23 = vector.load %arg1[%c2_17, %c0_18, %c0_19] : memref<9x8x8xf32, #tpu.memory_space<vmem>>, vector<1x8x8xf32>
    %24 = vector.shape_cast %23 : vector<1x8x8xf32> to vector<8x8xf32>
    %25 = vector.broadcast %22 : vector<8x1xf32> to vector<8x8xf32>
    %26 = arith.mulf %25, %24 : vector<8x8xf32>
    %27 = arith.addf %21, %26 : vector<8x8xf32>
    %c0_20 = arith.constant 0 : index
    %c3 = arith.constant 3 : index
    %28 = vector.load %arg2[%c0_20, %c3] : memref<8x9xf32, #tpu.memory_space<vmem>>, vector<8x1xf32>
    %c3_21 = arith.constant 3 : index
    %c0_22 = arith.constant 0 : index
    %c0_23 = arith.constant 0 : index
    %29 = vector.load %arg1[%c3_21, %c0_22, %c0_23] : memref<9x8x8xf32, #tpu.memory_space<vmem>>, vector<1x8x8xf32>
    %30 = vector.shape_cast %29 : vector<1x8x8xf32> to vector<8x8xf32>
    %31 = vector.broadcast %28 : vector<8x1xf32> to vector<8x8xf32>
    %32 = arith.mulf %31, %30 : vector<8x8xf32>
    %33 = arith.addf %27, %32 : vector<8x8xf32>
    %c0_24 = arith.constant 0 : index
    %c4_25 = arith.constant 4 : index
    %34 = vector.load %arg2[%c0_24, %c4_25] : memref<8x9xf32, #tpu.memory_space<vmem>>, vector<8x1xf32>
    %c4_26 = arith.constant 4 : index
    %c0_27 = arith.constant 0 : index
    %c0_28 = arith.constant 0 : index
    %35 = vector.load %arg1[%c4_26, %c0_27, %c0_28] : memref<9x8x8xf32, #tpu.memory_space<vmem>>, vector<1x8x8xf32>
    %36 = vector.shape_cast %35 : vector<1x8x8xf32> to vector<8x8xf32>
    %37 = vector.broadcast %34 : vector<8x1xf32> to vector<8x8xf32>
    %38 = arith.mulf %37, %36 : vector<8x8xf32>
    %39 = arith.addf %33, %38 : vector<8x8xf32>
    %c0_29 = arith.constant 0 : index
    %c5_30 = arith.constant 5 : index
    %40 = vector.load %arg2[%c0_29, %c5_30] : memref<8x9xf32, #tpu.memory_space<vmem>>, vector<8x1xf32>
    %c5_31 = arith.constant 5 : index
    %c0_32 = arith.constant 0 : index
    %c0_33 = arith.constant 0 : index
    %41 = vector.load %arg1[%c5_31, %c0_32, %c0_33] : memref<9x8x8xf32, #tpu.memory_space<vmem>>, vector<1x8x8xf32>
    %42 = vector.shape_cast %41 : vector<1x8x8xf32> to vector<8x8xf32>
    %43 = vector.broadcast %40 : vector<8x1xf32> to vector<8x8xf32>
    %44 = arith.mulf %43, %42 : vector<8x8xf32>
    %45 = arith.addf %39, %44 : vector<8x8xf32>
    %c0_34 = arith.constant 0 : index
    %c6 = arith.constant 6 : index
    %46 = vector.load %arg2[%c0_34, %c6] : memref<8x9xf32, #tpu.memory_space<vmem>>, vector<8x1xf32>
    %c6_35 = arith.constant 6 : index
    %c0_36 = arith.constant 0 : index
    %c0_37 = arith.constant 0 : index
    %47 = vector.load %arg1[%c6_35, %c0_36, %c0_37] : memref<9x8x8xf32, #tpu.memory_space<vmem>>, vector<1x8x8xf32>
    %48 = vector.shape_cast %47 : vector<1x8x8xf32> to vector<8x8xf32>
    %49 = vector.broadcast %46 : vector<8x1xf32> to vector<8x8xf32>
    %50 = arith.mulf %49, %48 : vector<8x8xf32>
    %51 = arith.addf %45, %50 : vector<8x8xf32>
    %c0_38 = arith.constant 0 : index
    %c7_39 = arith.constant 7 : index
    %52 = vector.load %arg2[%c0_38, %c7_39] : memref<8x9xf32, #tpu.memory_space<vmem>>, vector<8x1xf32>
    %c7_40 = arith.constant 7 : index
    %c0_41 = arith.constant 0 : index
    %c0_42 = arith.constant 0 : index
    %53 = vector.load %arg1[%c7_40, %c0_41, %c0_42] : memref<9x8x8xf32, #tpu.memory_space<vmem>>, vector<1x8x8xf32>
    %54 = vector.shape_cast %53 : vector<1x8x8xf32> to vector<8x8xf32>
    %55 = vector.broadcast %52 : vector<8x1xf32> to vector<8x8xf32>
    %56 = arith.mulf %55, %54 : vector<8x8xf32>
    %57 = arith.addf %51, %56 : vector<8x8xf32>
    %c0_43 = arith.constant 0 : index
    %c8_44 = arith.constant 8 : index
    %58 = vector.load %arg2[%c0_43, %c8_44] : memref<8x9xf32, #tpu.memory_space<vmem>>, vector<8x1xf32>
    %c8_45 = arith.constant 8 : index
    %c0_46 = arith.constant 0 : index
    %c0_47 = arith.constant 0 : index
    %59 = vector.load %arg1[%c8_45, %c0_46, %c0_47] : memref<9x8x8xf32, #tpu.memory_space<vmem>>, vector<1x8x8xf32>
    %60 = vector.shape_cast %59 : vector<1x8x8xf32> to vector<8x8xf32>
    %61 = vector.broadcast %58 : vector<8x1xf32> to vector<8x8xf32>
    %62 = arith.mulf %61, %60 : vector<8x8xf32>
    %63 = arith.addf %57, %62 : vector<8x8xf32>
    %64 = tpu.concatenate %10, %63 in 0 : vector<8x8xf32>, vector<8x8xf32> -> vector<16x8xf32>
    %c0_48 = arith.constant 0 : index
    %c0_49 = arith.constant 0 : index
    %65 = vector.load %arg3[%c0_48, %c0_49] : memref<8x16xf32, #tpu.memory_space<vmem>>, vector<8x16xf32>
    %cst = arith.constant dense<0.000000e+00> : vector<8x8xf32>
    %66 = tpu.matmul %65, %64, %cst {dimension_numbers = #tpu.dot_dimension_numbers<[1], [0], [0], [1], [0, 0, 1, 1], [], []>} : vector<8x16xf32>, vector<16x8xf32>, vector<8x8xf32> -> vector<8x8xf32>
    %c0_50 = arith.constant 0 : index
    %c0_51 = arith.constant 0 : index
    %67 = vector.load %arg4[%c0_50, %c0_51] : memref<8x1xf32, #tpu.memory_space<vmem>>, vector<8x1xf32>
    %68 = vector.broadcast %67 : vector<8x1xf32> to vector<8x8xf32>
    %69 = arith.addf %66, %68 : vector<8x8xf32>
    %cst_52 = arith.constant 0.000000e+00 : f32
    %70 = vector.broadcast %cst_52 : f32 to vector<8x8xf32>
    %71 = arith.maximumf %69, %70 : vector<8x8xf32>
    %c0_53 = arith.constant 0 : index
    %c0_54 = arith.constant 0 : index
    %72 = vector.load %arg5[%c0_53, %c0_54] : memref<8x8xf32, #tpu.memory_space<vmem>>, vector<8x8xf32>
    tpu.vector_store %arg5[%c0_53, %c0_54], %71 {strides = array<i32>} : memref<8x8xf32, #tpu.memory_space<vmem>>, vector<8x8xf32>,
    return
  }
  func.func @transform_0(%arg0: i32) -> (i32, i32, i32) {
    %c0_i32 = arith.constant 0 : i32
    %c0_i32_0 = arith.constant 0 : i32
    %c0_i32_1 = arith.constant 0 : i32
    %c0_i32_2 = arith.constant 0 : i32
    return %c0_i32, %c0_i32_0, %c0_i32_1 : i32, i32, i32
  }
  func.func @transform_1(%arg0: i32) -> (i32, i32) {
    %c0_i32 = arith.constant 0 : i32
    %c0_i32_0 = arith.constant 0 : i32
    %c0_i32_1 = arith.constant 0 : i32
    return %c0_i32, %c0_i32_0 : i32, i32
  }
  func.func @transform_2(%arg0: i32) -> (i32, i32) {
    %c0_i32 = arith.constant 0 : i32
    %c0_i32_0 = arith.constant 0 : i32
    %c0_i32_1 = arith.constant 0 : i32
    return %c0_i32, %c0_i32_0 : i32, i32
  }
  func.func @transform_3(%arg0: i32) -> (i32, i32) {
    %c0_i32 = arith.constant 0 : i32
    %c0_i32_0 = arith.constant 0 : i32
    %c0_i32_1 = arith.constant 0 : i32
    return %c0_i32, %c0_i32_0 : i32, i32
  }
  func.func @transform_4(%arg0: i32) -> (i32, i32) {
    %c0_i32 = arith.constant 0 : i32
    %c0_i32_0 = arith.constant 0 : i32
    %c0_i32_1 = arith.constant 0 : i32
    return %c0_i32, %c0_i32_0 : i32, i32
  }
}

module attributes {stable_mosaic.version = 11 : i64} {
  func.func @_downsample_kernel(%arg0: i32, %arg1: memref<9x8x2xf32, #tpu.memory_space<vmem>>, %arg2: memref<8x9xf32, #tpu.memory_space<vmem>>, %arg3: memref<8x16xf32, #tpu.memory_space<vmem>>, %arg4: memref<8x1xf32, #tpu.memory_space<vmem>>, %arg5: memref<8x2xf32, #tpu.memory_space<vmem>>) attributes {dimension_semantics = [#tpu.dimension_semantics<arbitrary>], iteration_bounds = array<i64: 1>, scalar_prefetch = 0 : i64, scratch_operands = 0 : i64, tpu.core_type = #tpu.core_type<tc>, window_params = [{pipeline_mode = #tpu.pipeline_mode<synchronous>, transform_indices = @transform_0, window_bounds = array<i64: 9, 8, 2>}, {pipeline_mode = #tpu.pipeline_mode<synchronous>, transform_indices = @transform_1, window_bounds = array<i64: 8, 9>}, {pipeline_mode = #tpu.pipeline_mode<synchronous>, transform_indices = @transform_2, window_bounds = array<i64: 8, 16>}, {pipeline_mode = #tpu.pipeline_mode<synchronous>, transform_indices = @transform_3, window_bounds = array<i64: 8, 1>}, {pipeline_mode = #tpu.pipeline_mode<synchronous>, transform_indices = @transform_4, window_bounds = array<i64: 8, 2>}]} {
    %c4 = arith.constant 4 : index
    %c0 = arith.constant 0 : index
    %c0_0 = arith.constant 0 : index
    %0 = vector.load %arg1[%c4, %c0, %c0_0] : memref<9x8x2xf32, #tpu.memory_space<vmem>>, vector<1x8x2xf32>
    %1 = vector.shape_cast %0 : vector<1x8x2xf32> to vector<8x2xf32>
    %c5 = arith.constant 5 : index
    %c0_1 = arith.constant 0 : index
    %c0_2 = arith.constant 0 : index
    %2 = vector.load %arg1[%c5, %c0_1, %c0_2] : memref<9x8x2xf32, #tpu.memory_space<vmem>>, vector<1x8x2xf32>
    %3 = vector.shape_cast %2 : vector<1x8x2xf32> to vector<8x2xf32>
    %4 = arith.maximumf %1, %3 : vector<8x2xf32>
    %c7 = arith.constant 7 : index
    %c0_3 = arith.constant 0 : index
    %c0_4 = arith.constant 0 : index
    %5 = vector.load %arg1[%c7, %c0_3, %c0_4] : memref<9x8x2xf32, #tpu.memory_space<vmem>>, vector<1x8x2xf32>
    %6 = vector.shape_cast %5 : vector<1x8x2xf32> to vector<8x2xf32>
    %c8 = arith.constant 8 : index
    %c0_5 = arith.constant 0 : index
    %c0_6 = arith.constant 0 : index
    %7 = vector.load %arg1[%c8, %c0_5, %c0_6] : memref<9x8x2xf32, #tpu.memory_space<vmem>>, vector<1x8x2xf32>
    %8 = vector.shape_cast %7 : vector<1x8x2xf32> to vector<8x2xf32>
    %9 = arith.maximumf %6, %8 : vector<8x2xf32>
    %10 = arith.maximumf %4, %9 : vector<8x2xf32>
    %c0_7 = arith.constant 0 : index
    %c0_8 = arith.constant 0 : index
    %11 = vector.load %arg2[%c0_7, %c0_8] : memref<8x9xf32, #tpu.memory_space<vmem>>, vector<8x1xf32>
    %c0_9 = arith.constant 0 : index
    %c0_10 = arith.constant 0 : index
    %c0_11 = arith.constant 0 : index
    %12 = vector.load %arg1[%c0_9, %c0_10, %c0_11] : memref<9x8x2xf32, #tpu.memory_space<vmem>>, vector<1x8x2xf32>
    %13 = vector.shape_cast %12 : vector<1x8x2xf32> to vector<8x2xf32>
    %14 = vector.broadcast %11 : vector<8x1xf32> to vector<8x2xf32>
    %15 = arith.mulf %14, %13 : vector<8x2xf32>
    %c0_12 = arith.constant 0 : index
    %c1 = arith.constant 1 : index
    %16 = vector.load %arg2[%c0_12, %c1] : memref<8x9xf32, #tpu.memory_space<vmem>>, vector<8x1xf32>
    %c1_13 = arith.constant 1 : index
    %c0_14 = arith.constant 0 : index
    %c0_15 = arith.constant 0 : index
    %17 = vector.load %arg1[%c1_13, %c0_14, %c0_15] : memref<9x8x2xf32, #tpu.memory_space<vmem>>, vector<1x8x2xf32>
    %18 = vector.shape_cast %17 : vector<1x8x2xf32> to vector<8x2xf32>
    %19 = vector.broadcast %16 : vector<8x1xf32> to vector<8x2xf32>
    %20 = arith.mulf %19, %18 : vector<8x2xf32>
    %21 = arith.addf %15, %20 : vector<8x2xf32>
    %c0_16 = arith.constant 0 : index
    %c2 = arith.constant 2 : index
    %22 = vector.load %arg2[%c0_16, %c2] : memref<8x9xf32, #tpu.memory_space<vmem>>, vector<8x1xf32>
    %c2_17 = arith.constant 2 : index
    %c0_18 = arith.constant 0 : index
    %c0_19 = arith.constant 0 : index
    %23 = vector.load %arg1[%c2_17, %c0_18, %c0_19] : memref<9x8x2xf32, #tpu.memory_space<vmem>>, vector<1x8x2xf32>
    %24 = vector.shape_cast %23 : vector<1x8x2xf32> to vector<8x2xf32>
    %25 = vector.broadcast %22 : vector<8x1xf32> to vector<8x2xf32>
    %26 = arith.mulf %25, %24 : vector<8x2xf32>
    %27 = arith.addf %21, %26 : vector<8x2xf32>
    %c0_20 = arith.constant 0 : index
    %c3 = arith.constant 3 : index
    %28 = vector.load %arg2[%c0_20, %c3] : memref<8x9xf32, #tpu.memory_space<vmem>>, vector<8x1xf32>
    %c3_21 = arith.constant 3 : index
    %c0_22 = arith.constant 0 : index
    %c0_23 = arith.constant 0 : index
    %29 = vector.load %arg1[%c3_21, %c0_22, %c0_23] : memref<9x8x2xf32, #tpu.memory_space<vmem>>, vector<1x8x2xf32>
    %30 = vector.shape_cast %29 : vector<1x8x2xf32> to vector<8x2xf32>
    %31 = vector.broadcast %28 : vector<8x1xf32> to vector<8x2xf32>
    %32 = arith.mulf %31, %30 : vector<8x2xf32>
    %33 = arith.addf %27, %32 : vector<8x2xf32>
    %c0_24 = arith.constant 0 : index
    %c4_25 = arith.constant 4 : index
    %34 = vector.load %arg2[%c0_24, %c4_25] : memref<8x9xf32, #tpu.memory_space<vmem>>, vector<8x1xf32>
    %c4_26 = arith.constant 4 : index
    %c0_27 = arith.constant 0 : index
    %c0_28 = arith.constant 0 : index
    %35 = vector.load %arg1[%c4_26, %c0_27, %c0_28] : memref<9x8x2xf32, #tpu.memory_space<vmem>>, vector<1x8x2xf32>
    %36 = vector.shape_cast %35 : vector<1x8x2xf32> to vector<8x2xf32>
    %37 = vector.broadcast %34 : vector<8x1xf32> to vector<8x2xf32>
    %38 = arith.mulf %37, %36 : vector<8x2xf32>
    %39 = arith.addf %33, %38 : vector<8x2xf32>
    %c0_29 = arith.constant 0 : index
    %c5_30 = arith.constant 5 : index
    %40 = vector.load %arg2[%c0_29, %c5_30] : memref<8x9xf32, #tpu.memory_space<vmem>>, vector<8x1xf32>
    %c5_31 = arith.constant 5 : index
    %c0_32 = arith.constant 0 : index
    %c0_33 = arith.constant 0 : index
    %41 = vector.load %arg1[%c5_31, %c0_32, %c0_33] : memref<9x8x2xf32, #tpu.memory_space<vmem>>, vector<1x8x2xf32>
    %42 = vector.shape_cast %41 : vector<1x8x2xf32> to vector<8x2xf32>
    %43 = vector.broadcast %40 : vector<8x1xf32> to vector<8x2xf32>
    %44 = arith.mulf %43, %42 : vector<8x2xf32>
    %45 = arith.addf %39, %44 : vector<8x2xf32>
    %c0_34 = arith.constant 0 : index
    %c6 = arith.constant 6 : index
    %46 = vector.load %arg2[%c0_34, %c6] : memref<8x9xf32, #tpu.memory_space<vmem>>, vector<8x1xf32>
    %c6_35 = arith.constant 6 : index
    %c0_36 = arith.constant 0 : index
    %c0_37 = arith.constant 0 : index
    %47 = vector.load %arg1[%c6_35, %c0_36, %c0_37] : memref<9x8x2xf32, #tpu.memory_space<vmem>>, vector<1x8x2xf32>
    %48 = vector.shape_cast %47 : vector<1x8x2xf32> to vector<8x2xf32>
    %49 = vector.broadcast %46 : vector<8x1xf32> to vector<8x2xf32>
    %50 = arith.mulf %49, %48 : vector<8x2xf32>
    %51 = arith.addf %45, %50 : vector<8x2xf32>
    %c0_38 = arith.constant 0 : index
    %c7_39 = arith.constant 7 : index
    %52 = vector.load %arg2[%c0_38, %c7_39] : memref<8x9xf32, #tpu.memory_space<vmem>>, vector<8x1xf32>
    %c7_40 = arith.constant 7 : index
    %c0_41 = arith.constant 0 : index
    %c0_42 = arith.constant 0 : index
    %53 = vector.load %arg1[%c7_40, %c0_41, %c0_42] : memref<9x8x2xf32, #tpu.memory_space<vmem>>, vector<1x8x2xf32>
    %54 = vector.shape_cast %53 : vector<1x8x2xf32> to vector<8x2xf32>
    %55 = vector.broadcast %52 : vector<8x1xf32> to vector<8x2xf32>
    %56 = arith.mulf %55, %54 : vector<8x2xf32>
    %57 = arith.addf %51, %56 : vector<8x2xf32>
    %c0_43 = arith.constant 0 : index
    %c8_44 = arith.constant 8 : index
    %58 = vector.load %arg2[%c0_43, %c8_44] : memref<8x9xf32, #tpu.memory_space<vmem>>, vector<8x1xf32>
    %c8_45 = arith.constant 8 : index
    %c0_46 = arith.constant 0 : index
    %c0_47 = arith.constant 0 : index
    %59 = vector.load %arg1[%c8_45, %c0_46, %c0_47] : memref<9x8x2xf32, #tpu.memory_space<vmem>>, vector<1x8x2xf32>
    %60 = vector.shape_cast %59 : vector<1x8x2xf32> to vector<8x2xf32>
    %61 = vector.broadcast %58 : vector<8x1xf32> to vector<8x2xf32>
    %62 = arith.mulf %61, %60 : vector<8x2xf32>
    %63 = arith.addf %57, %62 : vector<8x2xf32>
    %64 = tpu.concatenate %10, %63 in 0 : vector<8x2xf32>, vector<8x2xf32> -> vector<16x2xf32>
    %c0_48 = arith.constant 0 : index
    %c0_49 = arith.constant 0 : index
    %65 = vector.load %arg3[%c0_48, %c0_49] : memref<8x16xf32, #tpu.memory_space<vmem>>, vector<8x16xf32>
    %cst = arith.constant dense<0.000000e+00> : vector<8x2xf32>
    %66 = tpu.matmul %65, %64, %cst {dimension_numbers = #tpu.dot_dimension_numbers<[1], [0], [0], [1], [0, 0, 1, 1], [], []>} : vector<8x16xf32>, vector<16x2xf32>, vector<8x2xf32> -> vector<8x2xf32>
    %c0_50 = arith.constant 0 : index
    %c0_51 = arith.constant 0 : index
    %67 = vector.load %arg4[%c0_50, %c0_51] : memref<8x1xf32, #tpu.memory_space<vmem>>, vector<8x1xf32>
    %68 = vector.broadcast %67 : vector<8x1xf32> to vector<8x2xf32>
    %69 = arith.addf %66, %68 : vector<8x2xf32>
    %cst_52 = arith.constant 0.000000e+00 : f32
    %70 = vector.broadcast %cst_52 : f32 to vector<8x2xf32>
    %71 = arith.maximumf %69, %70 : vector<8x2xf32>
    %c0_53 = arith.constant 0 : index
    %c0_54 = arith.constant 0 : index
    %72 = vector.load %arg5[%c0_53, %c0_54] : memref<8x2xf32, #tpu.memory_space<vmem>>, vector<8x2xf32>
    tpu.vector_store %arg5[%c0_53, %c0_54], %71 {strides = array<i32>} : memref<8x2xf32, #tpu.memory_space<vmem>>, vector<8x2xf32>,
    return
  }
  func.func @transform_0(%arg0: i32) -> (i32, i32, i32) {
    %c0_i32 = arith.constant 0 : i32
    %c0_i32_0 = arith.constant 0 : i32
    %c0_i32_1 = arith.constant 0 : i32
    %c0_i32_2 = arith.constant 0 : i32
    return %c0_i32, %c0_i32_0, %c0_i32_1 : i32, i32, i32
  }
  func.func @transform_1(%arg0: i32) -> (i32, i32) {
    %c0_i32 = arith.constant 0 : i32
    %c0_i32_0 = arith.constant 0 : i32
    %c0_i32_1 = arith.constant 0 : i32
    return %c0_i32, %c0_i32_0 : i32, i32
  }
  func.func @transform_2(%arg0: i32) -> (i32, i32) {
    %c0_i32 = arith.constant 0 : i32
    %c0_i32_0 = arith.constant 0 : i32
    %c0_i32_1 = arith.constant 0 : i32
    return %c0_i32, %c0_i32_0 : i32, i32
  }
  func.func @transform_3(%arg0: i32) -> (i32, i32) {
    %c0_i32 = arith.constant 0 : i32
    %c0_i32_0 = arith.constant 0 : i32
    %c0_i32_1 = arith.constant 0 : i32
    return %c0_i32, %c0_i32_0 : i32, i32
  }
  func.func @transform_4(%arg0: i32) -> (i32, i32) {
    %c0_i32 = arith.constant 0 : i32
    %c0_i32_0 = arith.constant 0 : i32
    %c0_i32_1 = arith.constant 0 : i32
    return %c0_i32, %c0_i32_0 : i32, i32
  }
}

module attributes {stable_mosaic.version = 11 : i64} {
  func.func @_up_kernel(%arg0: i32, %arg1: memref<9x8x8xf32, #tpu.memory_space<vmem>>, %arg2: memref<8x8xf32, #tpu.memory_space<vmem>>, %arg3: memref<8x9xf32, #tpu.memory_space<vmem>>, %arg4: memref<8x1xf32, #tpu.memory_space<vmem>>, %arg5: memref<8x8xf32, #tpu.memory_space<vmem>>) attributes {dimension_semantics = [#tpu.dimension_semantics<arbitrary>], iteration_bounds = array<i64: 1>, scalar_prefetch = 0 : i64, scratch_operands = 0 : i64, tpu.core_type = #tpu.core_type<tc>, window_params = [{pipeline_mode = #tpu.pipeline_mode<synchronous>, transform_indices = @transform_0, window_bounds = array<i64: 9, 8, 8>}, {pipeline_mode = #tpu.pipeline_mode<synchronous>, transform_indices = @transform_1, window_bounds = array<i64: 8, 8>}, {pipeline_mode = #tpu.pipeline_mode<synchronous>, transform_indices = @transform_2, window_bounds = array<i64: 8, 9>}, {pipeline_mode = #tpu.pipeline_mode<synchronous>, transform_indices = @transform_3, window_bounds = array<i64: 8, 1>}, {pipeline_mode = #tpu.pipeline_mode<synchronous>, transform_indices = @transform_4, window_bounds = array<i64: 8, 8>}]} {
    %c0 = arith.constant 0 : index
    %c0_0 = arith.constant 0 : index
    %0 = vector.load %arg3[%c0, %c0_0] : memref<8x9xf32, #tpu.memory_space<vmem>>, vector<8x1xf32>
    %c0_1 = arith.constant 0 : index
    %c0_2 = arith.constant 0 : index
    %c0_3 = arith.constant 0 : index
    %1 = vector.load %arg1[%c0_1, %c0_2, %c0_3] : memref<9x8x8xf32, #tpu.memory_space<vmem>>, vector<1x8x8xf32>
    %2 = vector.shape_cast %1 : vector<1x8x8xf32> to vector<8x8xf32>
    %3 = vector.broadcast %0 : vector<8x1xf32> to vector<8x8xf32>
    %4 = arith.mulf %3, %2 : vector<8x8xf32>
    %c0_4 = arith.constant 0 : index
    %c1 = arith.constant 1 : index
    %5 = vector.load %arg3[%c0_4, %c1] : memref<8x9xf32, #tpu.memory_space<vmem>>, vector<8x1xf32>
    %c1_5 = arith.constant 1 : index
    %c0_6 = arith.constant 0 : index
    %c0_7 = arith.constant 0 : index
    %6 = vector.load %arg1[%c1_5, %c0_6, %c0_7] : memref<9x8x8xf32, #tpu.memory_space<vmem>>, vector<1x8x8xf32>
    %7 = vector.shape_cast %6 : vector<1x8x8xf32> to vector<8x8xf32>
    %8 = vector.broadcast %5 : vector<8x1xf32> to vector<8x8xf32>
    %9 = arith.mulf %8, %7 : vector<8x8xf32>
    %10 = arith.addf %4, %9 : vector<8x8xf32>
    %c0_8 = arith.constant 0 : index
    %c2 = arith.constant 2 : index
    %11 = vector.load %arg3[%c0_8, %c2] : memref<8x9xf32, #tpu.memory_space<vmem>>, vector<8x1xf32>
    %c2_9 = arith.constant 2 : index
    %c0_10 = arith.constant 0 : index
    %c0_11 = arith.constant 0 : index
    %12 = vector.load %arg1[%c2_9, %c0_10, %c0_11] : memref<9x8x8xf32, #tpu.memory_space<vmem>>, vector<1x8x8xf32>
    %13 = vector.shape_cast %12 : vector<1x8x8xf32> to vector<8x8xf32>
    %14 = vector.broadcast %11 : vector<8x1xf32> to vector<8x8xf32>
    %15 = arith.mulf %14, %13 : vector<8x8xf32>
    %16 = arith.addf %10, %15 : vector<8x8xf32>
    %c0_12 = arith.constant 0 : index
    %c3 = arith.constant 3 : index
    %17 = vector.load %arg3[%c0_12, %c3] : memref<8x9xf32, #tpu.memory_space<vmem>>, vector<8x1xf32>
    %c3_13 = arith.constant 3 : index
    %c0_14 = arith.constant 0 : index
    %c0_15 = arith.constant 0 : index
    %18 = vector.load %arg1[%c3_13, %c0_14, %c0_15] : memref<9x8x8xf32, #tpu.memory_space<vmem>>, vector<1x8x8xf32>
    %19 = vector.shape_cast %18 : vector<1x8x8xf32> to vector<8x8xf32>
    %20 = vector.broadcast %17 : vector<8x1xf32> to vector<8x8xf32>
    %21 = arith.mulf %20, %19 : vector<8x8xf32>
    %22 = arith.addf %16, %21 : vector<8x8xf32>
    %c0_16 = arith.constant 0 : index
    %c4 = arith.constant 4 : index
    %23 = vector.load %arg3[%c0_16, %c4] : memref<8x9xf32, #tpu.memory_space<vmem>>, vector<8x1xf32>
    %c4_17 = arith.constant 4 : index
    %c0_18 = arith.constant 0 : index
    %c0_19 = arith.constant 0 : index
    %24 = vector.load %arg1[%c4_17, %c0_18, %c0_19] : memref<9x8x8xf32, #tpu.memory_space<vmem>>, vector<1x8x8xf32>
    %25 = vector.shape_cast %24 : vector<1x8x8xf32> to vector<8x8xf32>
    %26 = vector.broadcast %23 : vector<8x1xf32> to vector<8x8xf32>
    %27 = arith.mulf %26, %25 : vector<8x8xf32>
    %28 = arith.addf %22, %27 : vector<8x8xf32>
    %c0_20 = arith.constant 0 : index
    %c5 = arith.constant 5 : index
    %29 = vector.load %arg3[%c0_20, %c5] : memref<8x9xf32, #tpu.memory_space<vmem>>, vector<8x1xf32>
    %c5_21 = arith.constant 5 : index
    %c0_22 = arith.constant 0 : index
    %c0_23 = arith.constant 0 : index
    %30 = vector.load %arg1[%c5_21, %c0_22, %c0_23] : memref<9x8x8xf32, #tpu.memory_space<vmem>>, vector<1x8x8xf32>
    %31 = vector.shape_cast %30 : vector<1x8x8xf32> to vector<8x8xf32>
    %32 = vector.broadcast %29 : vector<8x1xf32> to vector<8x8xf32>
    %33 = arith.mulf %32, %31 : vector<8x8xf32>
    %34 = arith.addf %28, %33 : vector<8x8xf32>
    %c0_24 = arith.constant 0 : index
    %c6 = arith.constant 6 : index
    %35 = vector.load %arg3[%c0_24, %c6] : memref<8x9xf32, #tpu.memory_space<vmem>>, vector<8x1xf32>
    %c6_25 = arith.constant 6 : index
    %c0_26 = arith.constant 0 : index
    %c0_27 = arith.constant 0 : index
    %36 = vector.load %arg1[%c6_25, %c0_26, %c0_27] : memref<9x8x8xf32, #tpu.memory_space<vmem>>, vector<1x8x8xf32>
    %37 = vector.shape_cast %36 : vector<1x8x8xf32> to vector<8x8xf32>
    %38 = vector.broadcast %35 : vector<8x1xf32> to vector<8x8xf32>
    %39 = arith.mulf %38, %37 : vector<8x8xf32>
    %40 = arith.addf %34, %39 : vector<8x8xf32>
    %c0_28 = arith.constant 0 : index
    %c7 = arith.constant 7 : index
    %41 = vector.load %arg3[%c0_28, %c7] : memref<8x9xf32, #tpu.memory_space<vmem>>, vector<8x1xf32>
    %c7_29 = arith.constant 7 : index
    %c0_30 = arith.constant 0 : index
    %c0_31 = arith.constant 0 : index
    %42 = vector.load %arg1[%c7_29, %c0_30, %c0_31] : memref<9x8x8xf32, #tpu.memory_space<vmem>>, vector<1x8x8xf32>
    %43 = vector.shape_cast %42 : vector<1x8x8xf32> to vector<8x8xf32>
    %44 = vector.broadcast %41 : vector<8x1xf32> to vector<8x8xf32>
    %45 = arith.mulf %44, %43 : vector<8x8xf32>
    %46 = arith.addf %40, %45 : vector<8x8xf32>
    %c0_32 = arith.constant 0 : index
    %c8 = arith.constant 8 : index
    %47 = vector.load %arg3[%c0_32, %c8] : memref<8x9xf32, #tpu.memory_space<vmem>>, vector<8x1xf32>
    %c8_33 = arith.constant 8 : index
    %c0_34 = arith.constant 0 : index
    %c0_35 = arith.constant 0 : index
    %48 = vector.load %arg1[%c8_33, %c0_34, %c0_35] : memref<9x8x8xf32, #tpu.memory_space<vmem>>, vector<1x8x8xf32>
    %49 = vector.shape_cast %48 : vector<1x8x8xf32> to vector<8x8xf32>
    %50 = vector.broadcast %47 : vector<8x1xf32> to vector<8x8xf32>
    %51 = arith.mulf %50, %49 : vector<8x8xf32>
    %52 = arith.addf %46, %51 : vector<8x8xf32>
    %c0_36 = arith.constant 0 : index
    %c0_37 = arith.constant 0 : index
    %53 = vector.load %arg4[%c0_36, %c0_37] : memref<8x1xf32, #tpu.memory_space<vmem>>, vector<8x1xf32>
    %54 = vector.broadcast %53 : vector<8x1xf32> to vector<8x8xf32>
    %55 = arith.addf %52, %54 : vector<8x8xf32>
    %cst = arith.constant 0.000000e+00 : f32
    %56 = vector.broadcast %cst : f32 to vector<8x8xf32>
    %57 = arith.maximumf %55, %56 : vector<8x8xf32>
    %c0_38 = arith.constant 0 : index
    %c0_39 = arith.constant 0 : index
    %58 = vector.load %arg2[%c0_38, %c0_39] : memref<8x8xf32, #tpu.memory_space<vmem>>, vector<8x8xf32>
    %59 = arith.addf %57, %58 : vector<8x8xf32>
    %c0_40 = arith.constant 0 : index
    %c0_41 = arith.constant 0 : index
    %60 = vector.load %arg5[%c0_40, %c0_41] : memref<8x8xf32, #tpu.memory_space<vmem>>, vector<8x8xf32>
    tpu.vector_store %arg5[%c0_40, %c0_41], %59 {strides = array<i32>} : memref<8x8xf32, #tpu.memory_space<vmem>>, vector<8x8xf32>,
    return
  }
  func.func @transform_0(%arg0: i32) -> (i32, i32, i32) {
    %c0_i32 = arith.constant 0 : i32
    %c0_i32_0 = arith.constant 0 : i32
    %c0_i32_1 = arith.constant 0 : i32
    %c0_i32_2 = arith.constant 0 : i32
    return %c0_i32, %c0_i32_0, %c0_i32_1 : i32, i32, i32
  }
  func.func @transform_1(%arg0: i32) -> (i32, i32) {
    %c0_i32 = arith.constant 0 : i32
    %c0_i32_0 = arith.constant 0 : i32
    %c0_i32_1 = arith.constant 0 : i32
    return %c0_i32, %c0_i32_0 : i32, i32
  }
  func.func @transform_2(%arg0: i32) -> (i32, i32) {
    %c0_i32 = arith.constant 0 : i32
    %c0_i32_0 = arith.constant 0 : i32
    %c0_i32_1 = arith.constant 0 : i32
    return %c0_i32, %c0_i32_0 : i32, i32
  }
  func.func @transform_3(%arg0: i32) -> (i32, i32) {
    %c0_i32 = arith.constant 0 : i32
    %c0_i32_0 = arith.constant 0 : i32
    %c0_i32_1 = arith.constant 0 : i32
    return %c0_i32, %c0_i32_0 : i32, i32
  }
  func.func @transform_4(%arg0: i32) -> (i32, i32) {
    %c0_i32 = arith.constant 0 : i32
    %c0_i32_0 = arith.constant 0 : i32
    %c0_i32_1 = arith.constant 0 : i32
    return %c0_i32, %c0_i32_0 : i32, i32
  }
}

module attributes {stable_mosaic.version = 11 : i64} {
  func.func @_up_kernel(%arg0: i32, %arg1: memref<9x8x32xf32, #tpu.memory_space<vmem>>, %arg2: memref<8x32xf32, #tpu.memory_space<vmem>>, %arg3: memref<8x9xf32, #tpu.memory_space<vmem>>, %arg4: memref<8x1xf32, #tpu.memory_space<vmem>>, %arg5: memref<8x32xf32, #tpu.memory_space<vmem>>) attributes {dimension_semantics = [#tpu.dimension_semantics<arbitrary>], iteration_bounds = array<i64: 1>, scalar_prefetch = 0 : i64, scratch_operands = 0 : i64, tpu.core_type = #tpu.core_type<tc>, window_params = [{pipeline_mode = #tpu.pipeline_mode<synchronous>, transform_indices = @transform_0, window_bounds = array<i64: 9, 8, 32>}, {pipeline_mode = #tpu.pipeline_mode<synchronous>, transform_indices = @transform_1, window_bounds = array<i64: 8, 32>}, {pipeline_mode = #tpu.pipeline_mode<synchronous>, transform_indices = @transform_2, window_bounds = array<i64: 8, 9>}, {pipeline_mode = #tpu.pipeline_mode<synchronous>, transform_indices = @transform_3, window_bounds = array<i64: 8, 1>}, {pipeline_mode = #tpu.pipeline_mode<synchronous>, transform_indices = @transform_4, window_bounds = array<i64: 8, 32>}]} {
    %c0 = arith.constant 0 : index
    %c0_0 = arith.constant 0 : index
    %0 = vector.load %arg3[%c0, %c0_0] : memref<8x9xf32, #tpu.memory_space<vmem>>, vector<8x1xf32>
    %c0_1 = arith.constant 0 : index
    %c0_2 = arith.constant 0 : index
    %c0_3 = arith.constant 0 : index
    %1 = vector.load %arg1[%c0_1, %c0_2, %c0_3] : memref<9x8x32xf32, #tpu.memory_space<vmem>>, vector<1x8x32xf32>
    %2 = vector.shape_cast %1 : vector<1x8x32xf32> to vector<8x32xf32>
    %3 = vector.broadcast %0 : vector<8x1xf32> to vector<8x32xf32>
    %4 = arith.mulf %3, %2 : vector<8x32xf32>
    %c0_4 = arith.constant 0 : index
    %c1 = arith.constant 1 : index
    %5 = vector.load %arg3[%c0_4, %c1] : memref<8x9xf32, #tpu.memory_space<vmem>>, vector<8x1xf32>
    %c1_5 = arith.constant 1 : index
    %c0_6 = arith.constant 0 : index
    %c0_7 = arith.constant 0 : index
    %6 = vector.load %arg1[%c1_5, %c0_6, %c0_7] : memref<9x8x32xf32, #tpu.memory_space<vmem>>, vector<1x8x32xf32>
    %7 = vector.shape_cast %6 : vector<1x8x32xf32> to vector<8x32xf32>
    %8 = vector.broadcast %5 : vector<8x1xf32> to vector<8x32xf32>
    %9 = arith.mulf %8, %7 : vector<8x32xf32>
    %10 = arith.addf %4, %9 : vector<8x32xf32>
    %c0_8 = arith.constant 0 : index
    %c2 = arith.constant 2 : index
    %11 = vector.load %arg3[%c0_8, %c2] : memref<8x9xf32, #tpu.memory_space<vmem>>, vector<8x1xf32>
    %c2_9 = arith.constant 2 : index
    %c0_10 = arith.constant 0 : index
    %c0_11 = arith.constant 0 : index
    %12 = vector.load %arg1[%c2_9, %c0_10, %c0_11] : memref<9x8x32xf32, #tpu.memory_space<vmem>>, vector<1x8x32xf32>
    %13 = vector.shape_cast %12 : vector<1x8x32xf32> to vector<8x32xf32>
    %14 = vector.broadcast %11 : vector<8x1xf32> to vector<8x32xf32>
    %15 = arith.mulf %14, %13 : vector<8x32xf32>
    %16 = arith.addf %10, %15 : vector<8x32xf32>
    %c0_12 = arith.constant 0 : index
    %c3 = arith.constant 3 : index
    %17 = vector.load %arg3[%c0_12, %c3] : memref<8x9xf32, #tpu.memory_space<vmem>>, vector<8x1xf32>
    %c3_13 = arith.constant 3 : index
    %c0_14 = arith.constant 0 : index
    %c0_15 = arith.constant 0 : index
    %18 = vector.load %arg1[%c3_13, %c0_14, %c0_15] : memref<9x8x32xf32, #tpu.memory_space<vmem>>, vector<1x8x32xf32>
    %19 = vector.shape_cast %18 : vector<1x8x32xf32> to vector<8x32xf32>
    %20 = vector.broadcast %17 : vector<8x1xf32> to vector<8x32xf32>
    %21 = arith.mulf %20, %19 : vector<8x32xf32>
    %22 = arith.addf %16, %21 : vector<8x32xf32>
    %c0_16 = arith.constant 0 : index
    %c4 = arith.constant 4 : index
    %23 = vector.load %arg3[%c0_16, %c4] : memref<8x9xf32, #tpu.memory_space<vmem>>, vector<8x1xf32>
    %c4_17 = arith.constant 4 : index
    %c0_18 = arith.constant 0 : index
    %c0_19 = arith.constant 0 : index
    %24 = vector.load %arg1[%c4_17, %c0_18, %c0_19] : memref<9x8x32xf32, #tpu.memory_space<vmem>>, vector<1x8x32xf32>
    %25 = vector.shape_cast %24 : vector<1x8x32xf32> to vector<8x32xf32>
    %26 = vector.broadcast %23 : vector<8x1xf32> to vector<8x32xf32>
    %27 = arith.mulf %26, %25 : vector<8x32xf32>
    %28 = arith.addf %22, %27 : vector<8x32xf32>
    %c0_20 = arith.constant 0 : index
    %c5 = arith.constant 5 : index
    %29 = vector.load %arg3[%c0_20, %c5] : memref<8x9xf32, #tpu.memory_space<vmem>>, vector<8x1xf32>
    %c5_21 = arith.constant 5 : index
    %c0_22 = arith.constant 0 : index
    %c0_23 = arith.constant 0 : index
    %30 = vector.load %arg1[%c5_21, %c0_22, %c0_23] : memref<9x8x32xf32, #tpu.memory_space<vmem>>, vector<1x8x32xf32>
    %31 = vector.shape_cast %30 : vector<1x8x32xf32> to vector<8x32xf32>
    %32 = vector.broadcast %29 : vector<8x1xf32> to vector<8x32xf32>
    %33 = arith.mulf %32, %31 : vector<8x32xf32>
    %34 = arith.addf %28, %33 : vector<8x32xf32>
    %c0_24 = arith.constant 0 : index
    %c6 = arith.constant 6 : index
    %35 = vector.load %arg3[%c0_24, %c6] : memref<8x9xf32, #tpu.memory_space<vmem>>, vector<8x1xf32>
    %c6_25 = arith.constant 6 : index
    %c0_26 = arith.constant 0 : index
    %c0_27 = arith.constant 0 : index
    %36 = vector.load %arg1[%c6_25, %c0_26, %c0_27] : memref<9x8x32xf32, #tpu.memory_space<vmem>>, vector<1x8x32xf32>
    %37 = vector.shape_cast %36 : vector<1x8x32xf32> to vector<8x32xf32>
    %38 = vector.broadcast %35 : vector<8x1xf32> to vector<8x32xf32>
    %39 = arith.mulf %38, %37 : vector<8x32xf32>
    %40 = arith.addf %34, %39 : vector<8x32xf32>
    %c0_28 = arith.constant 0 : index
    %c7 = arith.constant 7 : index
    %41 = vector.load %arg3[%c0_28, %c7] : memref<8x9xf32, #tpu.memory_space<vmem>>, vector<8x1xf32>
    %c7_29 = arith.constant 7 : index
    %c0_30 = arith.constant 0 : index
    %c0_31 = arith.constant 0 : index
    %42 = vector.load %arg1[%c7_29, %c0_30, %c0_31] : memref<9x8x32xf32, #tpu.memory_space<vmem>>, vector<1x8x32xf32>
    %43 = vector.shape_cast %42 : vector<1x8x32xf32> to vector<8x32xf32>
    %44 = vector.broadcast %41 : vector<8x1xf32> to vector<8x32xf32>
    %45 = arith.mulf %44, %43 : vector<8x32xf32>
    %46 = arith.addf %40, %45 : vector<8x32xf32>
    %c0_32 = arith.constant 0 : index
    %c8 = arith.constant 8 : index
    %47 = vector.load %arg3[%c0_32, %c8] : memref<8x9xf32, #tpu.memory_space<vmem>>, vector<8x1xf32>
    %c8_33 = arith.constant 8 : index
    %c0_34 = arith.constant 0 : index
    %c0_35 = arith.constant 0 : index
    %48 = vector.load %arg1[%c8_33, %c0_34, %c0_35] : memref<9x8x32xf32, #tpu.memory_space<vmem>>, vector<1x8x32xf32>
    %49 = vector.shape_cast %48 : vector<1x8x32xf32> to vector<8x32xf32>
    %50 = vector.broadcast %47 : vector<8x1xf32> to vector<8x32xf32>
    %51 = arith.mulf %50, %49 : vector<8x32xf32>
    %52 = arith.addf %46, %51 : vector<8x32xf32>
    %c0_36 = arith.constant 0 : index
    %c0_37 = arith.constant 0 : index
    %53 = vector.load %arg4[%c0_36, %c0_37] : memref<8x1xf32, #tpu.memory_space<vmem>>, vector<8x1xf32>
    %54 = vector.broadcast %53 : vector<8x1xf32> to vector<8x32xf32>
    %55 = arith.addf %52, %54 : vector<8x32xf32>
    %cst = arith.constant 0.000000e+00 : f32
    %56 = vector.broadcast %cst : f32 to vector<8x32xf32>
    %57 = arith.maximumf %55, %56 : vector<8x32xf32>
    %c0_38 = arith.constant 0 : index
    %c0_39 = arith.constant 0 : index
    %58 = vector.load %arg2[%c0_38, %c0_39] : memref<8x32xf32, #tpu.memory_space<vmem>>, vector<8x32xf32>
    %59 = arith.addf %57, %58 : vector<8x32xf32>
    %c0_40 = arith.constant 0 : index
    %c0_41 = arith.constant 0 : index
    %60 = vector.load %arg5[%c0_40, %c0_41] : memref<8x32xf32, #tpu.memory_space<vmem>>, vector<8x32xf32>
    tpu.vector_store %arg5[%c0_40, %c0_41], %59 {strides = array<i32>} : memref<8x32xf32, #tpu.memory_space<vmem>>, vector<8x32xf32>,
    return
  }
  func.func @transform_0(%arg0: i32) -> (i32, i32, i32) {
    %c0_i32 = arith.constant 0 : i32
    %c0_i32_0 = arith.constant 0 : i32
    %c0_i32_1 = arith.constant 0 : i32
    %c0_i32_2 = arith.constant 0 : i32
    return %c0_i32, %c0_i32_0, %c0_i32_1 : i32, i32, i32
  }
  func.func @transform_1(%arg0: i32) -> (i32, i32) {
    %c0_i32 = arith.constant 0 : i32
    %c0_i32_0 = arith.constant 0 : i32
    %c0_i32_1 = arith.constant 0 : i32
    return %c0_i32, %c0_i32_0 : i32, i32
  }
  func.func @transform_2(%arg0: i32) -> (i32, i32) {
    %c0_i32 = arith.constant 0 : i32
    %c0_i32_0 = arith.constant 0 : i32
    %c0_i32_1 = arith.constant 0 : i32
    return %c0_i32, %c0_i32_0 : i32, i32
  }
  func.func @transform_3(%arg0: i32) -> (i32, i32) {
    %c0_i32 = arith.constant 0 : i32
    %c0_i32_0 = arith.constant 0 : i32
    %c0_i32_1 = arith.constant 0 : i32
    return %c0_i32, %c0_i32_0 : i32, i32
  }
  func.func @transform_4(%arg0: i32) -> (i32, i32) {
    %c0_i32 = arith.constant 0 : i32
    %c0_i32_0 = arith.constant 0 : i32
    %c0_i32_1 = arith.constant 0 : i32
    return %c0_i32, %c0_i32_0 : i32, i32
  }
}

module attributes {stable_mosaic.version = 11 : i64} {
  func.func @_up_kernel(%arg0: i32, %arg1: memref<9x8x128xf32, #tpu.memory_space<vmem>>, %arg2: memref<8x128xf32, #tpu.memory_space<vmem>>, %arg3: memref<8x9xf32, #tpu.memory_space<vmem>>, %arg4: memref<8x1xf32, #tpu.memory_space<vmem>>, %arg5: memref<8x128xf32, #tpu.memory_space<vmem>>) attributes {dimension_semantics = [#tpu.dimension_semantics<arbitrary>], iteration_bounds = array<i64: 1>, scalar_prefetch = 0 : i64, scratch_operands = 0 : i64, tpu.core_type = #tpu.core_type<tc>, window_params = [{pipeline_mode = #tpu.pipeline_mode<synchronous>, transform_indices = @transform_0, window_bounds = array<i64: 9, 8, 128>}, {pipeline_mode = #tpu.pipeline_mode<synchronous>, transform_indices = @transform_1, window_bounds = array<i64: 8, 128>}, {pipeline_mode = #tpu.pipeline_mode<synchronous>, transform_indices = @transform_2, window_bounds = array<i64: 8, 9>}, {pipeline_mode = #tpu.pipeline_mode<synchronous>, transform_indices = @transform_3, window_bounds = array<i64: 8, 1>}, {pipeline_mode = #tpu.pipeline_mode<synchronous>, transform_indices = @transform_4, window_bounds = array<i64: 8, 128>}]} {
    %c0 = arith.constant 0 : index
    %c0_0 = arith.constant 0 : index
    %0 = vector.load %arg3[%c0, %c0_0] : memref<8x9xf32, #tpu.memory_space<vmem>>, vector<8x1xf32>
    %c0_1 = arith.constant 0 : index
    %c0_2 = arith.constant 0 : index
    %c0_3 = arith.constant 0 : index
    %1 = vector.load %arg1[%c0_1, %c0_2, %c0_3] : memref<9x8x128xf32, #tpu.memory_space<vmem>>, vector<1x8x128xf32>
    %2 = vector.shape_cast %1 : vector<1x8x128xf32> to vector<8x128xf32>
    %3 = vector.broadcast %0 : vector<8x1xf32> to vector<8x128xf32>
    %4 = arith.mulf %3, %2 : vector<8x128xf32>
    %c0_4 = arith.constant 0 : index
    %c1 = arith.constant 1 : index
    %5 = vector.load %arg3[%c0_4, %c1] : memref<8x9xf32, #tpu.memory_space<vmem>>, vector<8x1xf32>
    %c1_5 = arith.constant 1 : index
    %c0_6 = arith.constant 0 : index
    %c0_7 = arith.constant 0 : index
    %6 = vector.load %arg1[%c1_5, %c0_6, %c0_7] : memref<9x8x128xf32, #tpu.memory_space<vmem>>, vector<1x8x128xf32>
    %7 = vector.shape_cast %6 : vector<1x8x128xf32> to vector<8x128xf32>
    %8 = vector.broadcast %5 : vector<8x1xf32> to vector<8x128xf32>
    %9 = arith.mulf %8, %7 : vector<8x128xf32>
    %10 = arith.addf %4, %9 : vector<8x128xf32>
    %c0_8 = arith.constant 0 : index
    %c2 = arith.constant 2 : index
    %11 = vector.load %arg3[%c0_8, %c2] : memref<8x9xf32, #tpu.memory_space<vmem>>, vector<8x1xf32>
    %c2_9 = arith.constant 2 : index
    %c0_10 = arith.constant 0 : index
    %c0_11 = arith.constant 0 : index
    %12 = vector.load %arg1[%c2_9, %c0_10, %c0_11] : memref<9x8x128xf32, #tpu.memory_space<vmem>>, vector<1x8x128xf32>
    %13 = vector.shape_cast %12 : vector<1x8x128xf32> to vector<8x128xf32>
    %14 = vector.broadcast %11 : vector<8x1xf32> to vector<8x128xf32>
    %15 = arith.mulf %14, %13 : vector<8x128xf32>
    %16 = arith.addf %10, %15 : vector<8x128xf32>
    %c0_12 = arith.constant 0 : index
    %c3 = arith.constant 3 : index
    %17 = vector.load %arg3[%c0_12, %c3] : memref<8x9xf32, #tpu.memory_space<vmem>>, vector<8x1xf32>
    %c3_13 = arith.constant 3 : index
    %c0_14 = arith.constant 0 : index
    %c0_15 = arith.constant 0 : index
    %18 = vector.load %arg1[%c3_13, %c0_14, %c0_15] : memref<9x8x128xf32, #tpu.memory_space<vmem>>, vector<1x8x128xf32>
    %19 = vector.shape_cast %18 : vector<1x8x128xf32> to vector<8x128xf32>
    %20 = vector.broadcast %17 : vector<8x1xf32> to vector<8x128xf32>
    %21 = arith.mulf %20, %19 : vector<8x128xf32>
    %22 = arith.addf %16, %21 : vector<8x128xf32>
    %c0_16 = arith.constant 0 : index
    %c4 = arith.constant 4 : index
    %23 = vector.load %arg3[%c0_16, %c4] : memref<8x9xf32, #tpu.memory_space<vmem>>, vector<8x1xf32>
    %c4_17 = arith.constant 4 : index
    %c0_18 = arith.constant 0 : index
    %c0_19 = arith.constant 0 : index
    %24 = vector.load %arg1[%c4_17, %c0_18, %c0_19] : memref<9x8x128xf32, #tpu.memory_space<vmem>>, vector<1x8x128xf32>
    %25 = vector.shape_cast %24 : vector<1x8x128xf32> to vector<8x128xf32>
    %26 = vector.broadcast %23 : vector<8x1xf32> to vector<8x128xf32>
    %27 = arith.mulf %26, %25 : vector<8x128xf32>
    %28 = arith.addf %22, %27 : vector<8x128xf32>
    %c0_20 = arith.constant 0 : index
    %c5 = arith.constant 5 : index
    %29 = vector.load %arg3[%c0_20, %c5] : memref<8x9xf32, #tpu.memory_space<vmem>>, vector<8x1xf32>
    %c5_21 = arith.constant 5 : index
    %c0_22 = arith.constant 0 : index
    %c0_23 = arith.constant 0 : index
    %30 = vector.load %arg1[%c5_21, %c0_22, %c0_23] : memref<9x8x128xf32, #tpu.memory_space<vmem>>, vector<1x8x128xf32>
    %31 = vector.shape_cast %30 : vector<1x8x128xf32> to vector<8x128xf32>
    %32 = vector.broadcast %29 : vector<8x1xf32> to vector<8x128xf32>
    %33 = arith.mulf %32, %31 : vector<8x128xf32>
    %34 = arith.addf %28, %33 : vector<8x128xf32>
    %c0_24 = arith.constant 0 : index
    %c6 = arith.constant 6 : index
    %35 = vector.load %arg3[%c0_24, %c6] : memref<8x9xf32, #tpu.memory_space<vmem>>, vector<8x1xf32>
    %c6_25 = arith.constant 6 : index
    %c0_26 = arith.constant 0 : index
    %c0_27 = arith.constant 0 : index
    %36 = vector.load %arg1[%c6_25, %c0_26, %c0_27] : memref<9x8x128xf32, #tpu.memory_space<vmem>>, vector<1x8x128xf32>
    %37 = vector.shape_cast %36 : vector<1x8x128xf32> to vector<8x128xf32>
    %38 = vector.broadcast %35 : vector<8x1xf32> to vector<8x128xf32>
    %39 = arith.mulf %38, %37 : vector<8x128xf32>
    %40 = arith.addf %34, %39 : vector<8x128xf32>
    %c0_28 = arith.constant 0 : index
    %c7 = arith.constant 7 : index
    %41 = vector.load %arg3[%c0_28, %c7] : memref<8x9xf32, #tpu.memory_space<vmem>>, vector<8x1xf32>
    %c7_29 = arith.constant 7 : index
    %c0_30 = arith.constant 0 : index
    %c0_31 = arith.constant 0 : index
    %42 = vector.load %arg1[%c7_29, %c0_30, %c0_31] : memref<9x8x128xf32, #tpu.memory_space<vmem>>, vector<1x8x128xf32>
    %43 = vector.shape_cast %42 : vector<1x8x128xf32> to vector<8x128xf32>
    %44 = vector.broadcast %41 : vector<8x1xf32> to vector<8x128xf32>
    %45 = arith.mulf %44, %43 : vector<8x128xf32>
    %46 = arith.addf %40, %45 : vector<8x128xf32>
    %c0_32 = arith.constant 0 : index
    %c8 = arith.constant 8 : index
    %47 = vector.load %arg3[%c0_32, %c8] : memref<8x9xf32, #tpu.memory_space<vmem>>, vector<8x1xf32>
    %c8_33 = arith.constant 8 : index
    %c0_34 = arith.constant 0 : index
    %c0_35 = arith.constant 0 : index
    %48 = vector.load %arg1[%c8_33, %c0_34, %c0_35] : memref<9x8x128xf32, #tpu.memory_space<vmem>>, vector<1x8x128xf32>
    %49 = vector.shape_cast %48 : vector<1x8x128xf32> to vector<8x128xf32>
    %50 = vector.broadcast %47 : vector<8x1xf32> to vector<8x128xf32>
    %51 = arith.mulf %50, %49 : vector<8x128xf32>
    %52 = arith.addf %46, %51 : vector<8x128xf32>
    %c0_36 = arith.constant 0 : index
    %c0_37 = arith.constant 0 : index
    %53 = vector.load %arg4[%c0_36, %c0_37] : memref<8x1xf32, #tpu.memory_space<vmem>>, vector<8x1xf32>
    %54 = vector.broadcast %53 : vector<8x1xf32> to vector<8x128xf32>
    %55 = arith.addf %52, %54 : vector<8x128xf32>
    %cst = arith.constant 0.000000e+00 : f32
    %56 = vector.broadcast %cst : f32 to vector<8x128xf32>
    %57 = arith.maximumf %55, %56 : vector<8x128xf32>
    %c0_38 = arith.constant 0 : index
    %c0_39 = arith.constant 0 : index
    %58 = vector.load %arg2[%c0_38, %c0_39] : memref<8x128xf32, #tpu.memory_space<vmem>>, vector<8x128xf32>
    %59 = arith.addf %57, %58 : vector<8x128xf32>
    %c0_40 = arith.constant 0 : index
    %c0_41 = arith.constant 0 : index
    %60 = vector.load %arg5[%c0_40, %c0_41] : memref<8x128xf32, #tpu.memory_space<vmem>>, vector<8x128xf32>
    tpu.vector_store %arg5[%c0_40, %c0_41], %59 {strides = array<i32>} : memref<8x128xf32, #tpu.memory_space<vmem>>, vector<8x128xf32>,
    return
  }
  func.func @transform_0(%arg0: i32) -> (i32, i32, i32) {
    %c0_i32 = arith.constant 0 : i32
    %c0_i32_0 = arith.constant 0 : i32
    %c0_i32_1 = arith.constant 0 : i32
    %c0_i32_2 = arith.constant 0 : i32
    return %c0_i32, %c0_i32_0, %c0_i32_1 : i32, i32, i32
  }
  func.func @transform_1(%arg0: i32) -> (i32, i32) {
    %c0_i32 = arith.constant 0 : i32
    %c0_i32_0 = arith.constant 0 : i32
    %c0_i32_1 = arith.constant 0 : i32
    return %c0_i32, %c0_i32_0 : i32, i32
  }
  func.func @transform_2(%arg0: i32) -> (i32, i32) {
    %c0_i32 = arith.constant 0 : i32
    %c0_i32_0 = arith.constant 0 : i32
    %c0_i32_1 = arith.constant 0 : i32
    return %c0_i32, %c0_i32_0 : i32, i32
  }
  func.func @transform_3(%arg0: i32) -> (i32, i32) {
    %c0_i32 = arith.constant 0 : i32
    %c0_i32_0 = arith.constant 0 : i32
    %c0_i32_1 = arith.constant 0 : i32
    return %c0_i32, %c0_i32_0 : i32, i32
  }
  func.func @transform_4(%arg0: i32) -> (i32, i32) {
    %c0_i32 = arith.constant 0 : i32
    %c0_i32_0 = arith.constant 0 : i32
    %c0_i32_1 = arith.constant 0 : i32
    return %c0_i32, %c0_i32_0 : i32, i32
  }
}

</mosaic_0001>

<bundles_post_ra>
// kernel: forward.7
= control target key start
LH: loop header
LB: loop body
LE: loop exit
PB: predicated region body
PF: predicated region fallthrough
CT: control target
= control target key end

     0   :  { %v228_v0 = vmov 0.0   ;;  %vm229_vm0 = vmmov 0   ;;  %v230_v3 = vmov 0   ;;  %vm33_vm1 = vcmask 261120   ;;  %s298_s0 = inlined_call_operand.vmem [shape: f32[32,128], index: 0, kind: input, shape index: {}]   ;;  %s299_s2 = inlined_call_operand.vmem [shape: f32[8,1], index: 2, kind: input, shape index: {}]   ;;  %s300_s4 = inlined_call_operand.vmem [shape: f32[8,1], index: 4, kind: input, shape index: {}]   ;;  %s301_s1 = inlined_call_operand.vmem [shape: f32[8,32], index: 1, kind: input, shape index: {}]   ;;  %s302_s3 = inlined_call_operand.vmem [shape: f32[8,8], index: 3, kind: input, shape index: {}]   ;;  %s303_s5 = inlined_call_operand.vmem [shape: f32[8,128], index: 5, kind: output, shape index: {0}]   ;;  %s304_s6 = inlined_call_operand.vmem [shape: f32[8,128], index: 6, kind: output, shape index: {1}]  }
   0x1   :  { %208 = vmatprep.subr.mxu0 %v228_v0  ;;  %v26_v1 = vld [vmem:[%s298_s0 + $0x18] sm:$0xff]  ;;  %v25_v2 = vld [vmem:[%s298_s0 + $0x10] sm:$0xff]  ;;  %216 = vmatprep.mubr.msk.f32.mxu0 %vm229_vm0, %v228_v0  ;;  %v27_v4 = vld [vmem:[%s299_s2] sm:$0xff]  ;;  %vm116_vm2 = vcmask 64512  }
   0x2   :  { %209 = vmatpush3.msra.mxu0 %v26_v1  ;;  %227 = vset.pattern.permute.xlu0 %v230_v3  ;;  %v24_v5 = vld [vmem:[%s298_s0 + $0x8] sm:$0xff]  ;;  %v110_v6 = vld [vmem:[%s300_s4] sm:$0xff] }
   0x3   :  { %210 = vmatprep.subr.mxu0 %v228_v0  ;;  %30 = vperm.xlu0 %227, %v27_v4   ;;  %v23_v7 = vld [vmem:[%s298_s0] sm:$0xff] }
   0x4   :  { %211 = vmatpush3.msra.mxu0 %v25_v2  ;;  %219 = vmatprep.subr.mxu1 %v228_v0  ;;  %v22_v8 = vld [vmem:[%s301_s1] sm:$0xff] }
   0x5   :  { %212 = vmatprep.subr.mxu0 %v228_v0  ;;  %221 = vmatprep.mubr.msk.f32.mxu1 %vm229_vm0, %v228_v0  ;;  %v109_v14 = vld [vmem:[%s302_s3] sm:$0xff] }
   0x6   :  { %213 = vmatpush3.msra.mxu0 %v24_v5 }
   0x7   :  { %214 = vmatprep.subr.mxu0 %v228_v0  ;;  %113 = vperm.xlu0 %227, %v110_v6  }
   0x8   :  { %215 = vmatpush3.msra.mxu0 %v23_v7 }
   0x9   :  { %217 = vmatmul.mubr.msk.f32.vlgmr.msra.gmra.mxu0 %vm33_vm1, %v22_v8 }
  0x7e   :  { %v31_v9 = vpop.permute.xlu0 %30 }
  0x82   :  { %v114_v15 = vpop.permute.xlu0 %113 }
  0xc9   :  { %v103_v10 = vpop.f32.mrf.mxu0 }
  0xca   :  { %v104_v11 = vadd.f32 %v103_v10, %v31_v9 }
  0xcb   :  { %v218_v12 = vpop.f32.mrf.mxu0 }
  0xcc   :  { %v107_v13 = vmax.f32 %v104_v11, 0.0 }
  0xce   :  { %108 = vst [vmem:[%s303_s5] sm:$0xff] %v107_v13  ;;  %220 = vmatpush3.msra.mxu1 %v107_v13 }
  0xcf   :  { %222 = vmatmul.mubr.msk.f32.vlgmr.msra.gmra.mxu1 %vm116_vm2, %v109_v14 }
 0x18f   :  { %v186_v16 = vpop.f32.mrf.mxu1 }
 0x190   :  { %v187_v17 = vadd.f32 %v186_v16, %v114_v15 }
 0x191   :  { %v223_v18 = vpop.f32.mrf.mxu1 }
 0x192   :  { %190 = vst [vmem:[%s304_s6] sm:$0xff] %v187_v17 }

// kernel: forward.8
= control target key start
LH: loop header
LB: loop body
LE: loop exit
PB: predicated region body
PF: predicated region fallthrough
CT: control target
= control target key end

     0   :  { %vm46_vm0 = vcmask 588800   ;;  %v310_v2 = vmov 0   ;;  %s407_s0 = inlined_call_operand.vmem [shape: f32[72,32], index: 0, kind: input, shape index: {}]   ;;  %s408_s1 = inlined_call_operand.vmem [shape: f32[16,72], index: 1, kind: input, shape index: {}]   ;;  %s409_s2 = inlined_call_operand.vmem [shape: f32[16,1], index: 2, kind: input, shape index: {}]   ;;  %s410_s3 = inlined_call_operand.vmem [shape: f32[8,16], index: 3, kind: input, shape index: {}]   ;;  %s411_s4 = inlined_call_operand.vmem [shape: f32[8,1], index: 4, kind: input, shape index: {}]   ;;  %s412_s5 = inlined_call_operand.hbm [shape: f32[16,32], index: 5, kind: output, shape index: {0}]   ;;  %s413_s6 = inlined_call_operand.vmem [shape: f32[8,32], index: 6, kind: output, shape index: {1}]  }
   0x1   :  { %v33_v0 = vld [vmem:[%s407_s0 + $0x40] sm:$0xff]  ;;  %v32_v1 = vld [vmem:[%s407_s0 + $0x38] sm:$0xff]  ;;  %286 = vset.pattern.permute.xlu0 %v310_v2  ;;  %v31_v3 = vld [vmem:[%s407_s0 + $0x30] sm:$0xff]  ;;  %287 = vset.pattern.permute.xlu1 %v310_v2 }
   0x2   :  { %252 = vmatprep.subr.mxu0 %v33_v0  ;;  %v23_v4 = vld [vmem:[%s408_s1] sm:$0xff]  ;;  %v35_v5 = vld [vmem:[%s409_s2 + $0x8] sm:$0xff] }
   0x3   :  { %253 = vmatpush3.msra.mxu0 %v33_v0  ;;  %v30_v6 = vld [vmem:[%s407_s0 + $0x28] sm:$0xff]  ;;  %270 = vmatprep.mubr.msk.f32.mxu0 %vm46_vm0, %v23_v4 }
   0x4   :  { %254 = vmatprep.subr.mxu0 %v32_v1 }
   0x5   :  { %255 = vmatpush3.msra.mxu0 %v32_v1 }
   0x6   :  { %12 = vsyncpa [#allocation3], 0  ;;  %256 = vmatprep.subr.mxu0 %v31_v3  ;;  %43 = vperm.xlu0 %286, %v35_v5   ;;  %v29_v7 = vld [vmem:[%s407_s0 + $0x20] sm:$0xff]  ;;  %v28_v9 = vld [vmem:[%s407_s0 + $0x18] sm:$0xff]  ;;  %v311_v14 = vmov 0.0   ;;  %vm312_vm1 = vmmov 0  }
   0x7   :  { %257 = vmatpush3.msra.mxu0 %v31_v3  ;;  %v34_v8 = vld [vmem:[%s409_s2] sm:$0xff]  ;;  %v27_v10 = vld [vmem:[%s407_s0 + $0x10] sm:$0xff]  ;;  %v26_v11 = vld [vmem:[%s407_s0 + $0x8] sm:$0xff]  ;;  %273 = vmatprep.subr.mxu1 %v311_v14  ;;  %vm130_vm2 = vcmask 261120   ;;  %vm140_vm3 = vcmask 130048  }
   0x8   :  { %258 = vmatprep.subr.mxu0 %v30_v6  ;;  %v25_v12 = vld [vmem:[%s407_s0] sm:$0xff]  ;;  %v24_v13 = vld [vmem:[%s408_s1 + $0x8] sm:$0xff]  ;;  %277 = vmatprep.mubr.msk.f32.mxu1 %vm312_vm1, %v311_v14 }
   0x9   :  { %259 = vmatpush3.msra.mxu0 %v30_v6  ;;  %v134_v15 = vld [vmem:[%s411_s4] sm:$0xff]  ;;  %s313_s4 = smov [#allocation2]  }
   0xa   :  { %260 = vmatprep.subr.mxu0 %v29_v7  ;;  %38 = vperm.xlu0 %286, %v34_v8   ;;  %v133_v24 = vld [vmem:[%s410_s3] sm:$0xff]  ;;  %s220_s24 = sshll.u32 %s313_s4, 4  ;;  %s221_s24 = int_to_ptr.vmem [resolvable:$true] %s220_s24 }
   0xb   :  { %261 = vmatpush3.msra.mxu0 %v29_v7  ;;  %137 = vperm.xlu1 %287, %v134_v15   ;;  %s288_s25 = scalar_lea.vmem %s221_s24, 256  ;;  %p293_p1 = scmp.lt.s32.totalorder %s221_s24, %s221_s24 }
   0xc   :  { %262 = vmatprep.subr.mxu0 %v28_v9  ;;  %p289_p0 = scmp.ne.s32.totalorder %s221_s24, %s288_s25  ;;  %p294_p2 = scmp.lt.s32.totalorder %s288_s25, %s288_s25 }
   0xd   :  { %263 = vmatpush3.msra.mxu0 %v28_v9 }
   0xe   :  { %264 = vmatprep.subr.mxu0 %v27_v10  ;;  %p295_p3 = por %p294_p2, %p293_p1 }
   0xf   :  { %265 = vmatpush3.msra.mxu0 %v27_v10 }
  0x10   :  { %266 = vmatprep.subr.mxu0 %v26_v11  ;;  %p296_p4 = pnand %p295_p3, %p289_p0 }
  0x11   :  { %267 = vmatpush3.msra.mxu0 %v26_v11 }
  0x12   :  { %268 = vmatprep.subr.mxu0 %v25_v12 }
  0x13   :  { %269 = vmatpush3.msra.mxu0 %v25_v12 }
  0x14   :  { %271 = vmatmul.mubr.msk.f32.vlgmr.msra.gmra.mxu0 %vm46_vm0, %v24_v13 }
  0x81   :  { %v44_v16 = vpop.permute.xlu0 %43 }
  0x85   :  { %v39_v19 = vpop.permute.xlu0 %38 }
  0xd4   :  { %v272_v17 = vpop.f32.mrf.mxu0 }
  0xd5   :  { %v125_v18 = vadd.f32 %v272_v17, %v44_v16 }
  0xd6   :  { %v119_v20 = vpop.f32.mrf.mxu0 }
  0xd7   :  { %v129_v21 = vmax.f32 %v125_v18, 0.0  ;;  %v120_v22 = vadd.f32 %v119_v20, %v39_v19 }
  0xd9   :  { %132 = vst.msk [vmem:[#allocation2 + $0x8] sm:$0xff] %vm130_vm2, %v129_v21  ;;  %v128_v23 = vmax.f32 %v120_v22, 0.0  ;;  %274 = vmatpush3.msra.mxu1 %v129_v21 }
  0xda   :  { %275 = vmatprep.subr.mxu1 %v311_v14 }
  0xdb   :  { %131 = vst.msk [vmem:[#allocation2] sm:$0xff] %vm130_vm2, %v128_v23  ;;  %276 = vmatpush3.msra.mxu1 %v128_v23 }
  0xdc   :  { %278 = vmatmul.mubr.msk.f32.vlgmr.msra.gmra.mxu1 %vm140_vm3, %v133_v24 }
  0xdd   :  { %299 = shalt.err (!%p296_p4)
}
  0xde   :  { %s314_s26 = smov 128   ;;  %s315_s27 = smov 8   ;;  %v138_v25 = vpop.permute.xlu1 %137 }
  0xdf   :  { %226 = dma.vmem_to_hbm [thread:$0]  %s221_s24, 256, %s412_s5, [#allocation3], %s314_s26, %s314_s26, %s315_s27  }
 0x19c   :  { %v210_v26 = vpop.f32.mrf.mxu1 }
 0x19d   :  { %v211_v27 = vadd.f32 %v210_v26, %v138_v25 }
 0x19e   :  { %v279_v28 = vpop.f32.mrf.mxu1 }
 0x19f   :  { %214 = vst.msk [vmem:[%s413_s6] sm:$0xff] %vm130_vm2, %v211_v27 }
 0x1a0   :  { %308 = dma.done.wait [#allocation3], 256  }
 0x1a1   :  { %309 = vsyncadd [#allocation3], 4294967040 }
 0x1a2   :  { %234 = vsyncpa [#allocation3], 1 }

// kernel: forward.9
= control target key start
LH: loop header
LB: loop body
LE: loop exit
PB: predicated region body
PF: predicated region fallthrough
CT: control target
= control target key end

     0   :  { %v221_v0 = vmov 2   ;;  %v222_v1 = vmov 0   ;;  %v223_v3 = vmov 3   ;;  %v224_v4 = vmov 1   ;;  %s296_s1 = inlined_call_operand.vmem [shape: f32[8,9], index: 1, kind: input, shape index: {}]   ;;  %s297_s3 = inlined_call_operand.vmem [shape: f32[8,1], index: 3, kind: input, shape index: {}]   ;;  %s298_s0 = inlined_call_operand.vmem [shape: f32[9,8,8], index: 0, kind: input, shape index: {}]   ;;  %s299_s2 = inlined_call_operand.vmem [shape: f32[8,16], index: 2, kind: input, shape index: {}]   ;;  %s300_s4 = inlined_call_operand.vmem [shape: f32[8,8], index: 4, kind: output, shape index: {}]  }
   0x1   :  { %212 = vset.pattern.permute.xlu1 %v221_v0  ;;  %210 = vset.pattern.permute.xlu0 %v222_v1  ;;  %v28_v2 = vld [vmem:[%s296_s1] sm:$0xff]  ;;  %v225_v5 = vmov 4   ;;  %v226_v6 = vmov 5   ;;  %v227_v7 = vmov 6   ;;  %v228_v8 = vmov 8   ;;  %v184_v15 = vld [vmem:[%s298_s0 + $0x8] sm:$0xff] }
   0x2   :  { %47 = vperm.xlu1 %212, %v28_v2   ;;  %32 = vperm.xlu0 %210, %v28_v2   ;;  %v229_v9 = vmov 7   ;;  %v230_v10 = vmov 0.0   ;;  %vm231_vm0 = vmmov 0   ;;  %v93_v11 = vld [vmem:[%s297_s3] sm:$0xff]  ;;  %v185_v16 = vld [vmem:[%s298_s0 + $0x10] sm:$0xff]  ;;  %v186_v21 = vld [vmem:[%s298_s0 + $0x18] sm:$0xff] }
   0x3   :  { %192 = vmatprep.subr.mxu0 %v230_v10  ;;  %196 = vmatprep.mubr.msk.f32.mxu0 %vm231_vm0, %v230_v10  ;;  %v29_v14 = vld [vmem:[%s298_s0] sm:$0xff]  ;;  %v181_v29 = vld [vmem:[%s298_s0 + $0x28] sm:$0xff]  ;;  %v187_v34 = vld [vmem:[%s298_s0 + $0x30] sm:$0xff]  ;;  %vm99_vm1 = vcmask 130048   ;;  %vm174_vm2 = vcmask 64512  }
   0x4   :  { %v180_v24 = vld [vmem:[%s298_s0 + $0x20] sm:$0xff]  ;;  %v182_v38 = vld [vmem:[%s298_s0 + $0x38] sm:$0xff] }
   0x5   :  { %v183_v40 = vld [vmem:[%s298_s0 + $0x40] sm:$0xff]  ;;  %v21_v41 = vmax.f32 %v180_v24, %v181_v29 }
   0x6   :  { %213 = vset.pattern.permute.xlu1 %v223_v3  ;;  %211 = vset.pattern.permute.xlu0 %v224_v4  ;;  %v26_v45 = vmax.f32 %v182_v38, %v183_v40  ;;  %v92_v50 = vld [vmem:[%s299_s2] sm:$0xff] }
   0x7   :  { %55 = vperm.xlu1 %213, %v28_v2   ;;  %39 = vperm.xlu0 %211, %v28_v2  }
   0x8   :  { %v27_v49 = vmax.f32 %v21_v41, %v26_v45 }
   0xb   :  { %214 = vset.pattern.permute.xlu1 %v225_v5  ;;  %215 = vset.pattern.permute.xlu0 %v226_v6 }
   0xc   :  { %61 = vperm.xlu1 %214, %v28_v2   ;;  %67 = vperm.xlu0 %215, %v28_v2  }
  0x10   :  { %216 = vset.pattern.permute.xlu1 %v227_v7  ;;  %218 = vset.pattern.permute.xlu0 %v228_v8 }
  0x11   :  { %75 = vperm.xlu1 %216, %v28_v2   ;;  %87 = vperm.xlu0 %218, %v28_v2  }
  0x15   :  { %217 = vset.pattern.permute.xlu1 %v229_v9  ;;  %220 = vset.pattern.permute.xlu0 %v222_v1 }
  0x16   :  { %81 = vperm.xlu1 %217, %v28_v2  }
  0x1a   :  { %219 = vset.pattern.permute.xlu1 %v222_v1 }
  0x1b   :  { %96 = vperm.xlu1 %219, %v93_v11  }
  0x7d   :  { %v48_v12 = vpop.permute.xlu1 %47  ;;  %v33_v13 = vpop.permute.xlu0 %32 }
  0x7e   :  { %v35_v19 = vmul.f32 %v33_v13, %v29_v14  ;;  %v50_v22 = vmul.f32 %v185_v16, %v48_v12 }
  0x82   :  { %v56_v17 = vpop.permute.xlu1 %55  ;;  %v40_v18 = vpop.permute.xlu0 %39 }
  0x83   :  { %v42_v20 = vmul.f32 %v184_v15, %v40_v18  ;;  %v58_v25 = vmul.f32 %v186_v21, %v56_v17 }
  0x85   :  { %v43_v23 = vadd.f32 %v42_v20, %v35_v19 }
  0x87   :  { %v51_v26 = vadd.f32 %v50_v22, %v43_v23  ;;  %v62_v27 = vpop.permute.xlu1 %61  ;;  %v68_v28 = vpop.permute.xlu0 %67 }
  0x88   :  { %v64_v30 = vmul.f32 %v180_v24, %v62_v27  ;;  %v70_v32 = vmul.f32 %v181_v29, %v68_v28 }
  0x89   :  { %v59_v31 = vadd.f32 %v58_v25, %v51_v26 }
  0x8b   :  { %v65_v33 = vadd.f32 %v64_v30, %v59_v31 }
  0x8c   :  { %v76_v35 = vpop.permute.xlu1 %75  ;;  %v88_v39 = vpop.permute.xlu0 %87 }
  0x8d   :  { %v71_v36 = vadd.f32 %v70_v32, %v65_v33  ;;  %v78_v37 = vmul.f32 %v187_v34, %v76_v35  ;;  %v90_v46 = vmul.f32 %v183_v40, %v88_v39 }
  0x8f   :  { %v79_v43 = vadd.f32 %v78_v37, %v71_v36 }
  0x91   :  { %v82_v42 = vpop.permute.xlu1 %81 }
  0x92   :  { %v84_v44 = vmul.f32 %v182_v38, %v82_v42 }
  0x94   :  { %v85_v47 = vadd.f32 %v84_v44, %v79_v43 }
  0x96   :  { %v91_v48 = vadd.f32 %v90_v46, %v85_v47  ;;  %v97_v51 = vpop.permute.xlu1 %96 }
  0x98   :  { %193 = vmatpush3.msra.mxu0 %v91_v48 }
  0x99   :  { %194 = vmatprep.subr.mxu0 %v230_v10 }
  0x9a   :  { %195 = vmatpush3.msra.mxu0 %v27_v49 }
  0x9b   :  { %197 = vmatmul.mubr.msk.f32.vlgmr.msra.gmra.mxu0 %vm99_vm1, %v92_v50 }
 0x15b   :  { %v169_v52 = vpop.f32.mrf.mxu0 }
 0x15c   :  { %v170_v53 = vadd.f32 %v169_v52, %v97_v51 }
 0x15d   :  { %v198_v54 = vpop.f32.mrf.mxu0 }
 0x15e   :  { %v173_v55 = vmax.f32 %v170_v53, 0.0 }
 0x160   :  { %175 = vst.msk [vmem:[%s300_s4] sm:$0xff] %vm174_vm2, %v173_v55 }

// kernel: forward.10
= control target key start
LH: loop header
LB: loop body
LE: loop exit
PB: predicated region body
PF: predicated region fallthrough
CT: control target
= control target key end

     0   :  { %v221_v0 = vmov 2   ;;  %v222_v1 = vmov 0   ;;  %v223_v3 = vmov 3   ;;  %v224_v4 = vmov 1   ;;  %s296_s1 = inlined_call_operand.vmem [shape: f32[8,9], index: 1, kind: input, shape index: {}]   ;;  %s297_s3 = inlined_call_operand.vmem [shape: f32[8,1], index: 3, kind: input, shape index: {}]   ;;  %s298_s0 = inlined_call_operand.vmem [shape: f32[9,8,2], index: 0, kind: input, shape index: {}]   ;;  %s299_s2 = inlined_call_operand.vmem [shape: f32[8,16], index: 2, kind: input, shape index: {}]   ;;  %s300_s4 = inlined_call_operand.vmem [shape: f32[8,2], index: 4, kind: output, shape index: {}]  }
   0x1   :  { %212 = vset.pattern.permute.xlu1 %v221_v0  ;;  %210 = vset.pattern.permute.xlu0 %v222_v1  ;;  %v28_v2 = vld [vmem:[%s296_s1] sm:$0xff]  ;;  %v225_v5 = vmov 4   ;;  %v226_v6 = vmov 5   ;;  %v227_v7 = vmov 6   ;;  %v228_v8 = vmov 8   ;;  %v184_v15 = vld [vmem:[%s298_s0 + $0x8] sm:$0xff] }
   0x2   :  { %47 = vperm.xlu1 %212, %v28_v2   ;;  %32 = vperm.xlu0 %210, %v28_v2   ;;  %v229_v9 = vmov 7   ;;  %v230_v10 = vmov 0.0   ;;  %vm231_vm0 = vmmov 0   ;;  %v93_v11 = vld [vmem:[%s297_s3] sm:$0xff]  ;;  %v185_v16 = vld [vmem:[%s298_s0 + $0x10] sm:$0xff]  ;;  %v186_v21 = vld [vmem:[%s298_s0 + $0x18] sm:$0xff] }
   0x3   :  { %192 = vmatprep.subr.mxu0 %v230_v10  ;;  %196 = vmatprep.mubr.msk.f32.mxu0 %vm231_vm0, %v230_v10  ;;  %v29_v14 = vld [vmem:[%s298_s0] sm:$0xff]  ;;  %v181_v29 = vld [vmem:[%s298_s0 + $0x28] sm:$0xff]  ;;  %v187_v34 = vld [vmem:[%s298_s0 + $0x30] sm:$0xff]  ;;  %vm99_vm1 = vcmask 130048   ;;  %vm174_vm2 = vcmask 15360  }
   0x4   :  { %v180_v24 = vld [vmem:[%s298_s0 + $0x20] sm:$0xff]  ;;  %v182_v38 = vld [vmem:[%s298_s0 + $0x38] sm:$0xff] }
   0x5   :  { %v183_v40 = vld [vmem:[%s298_s0 + $0x40] sm:$0xff]  ;;  %v21_v41 = vmax.f32 %v180_v24, %v181_v29 }
   0x6   :  { %213 = vset.pattern.permute.xlu1 %v223_v3  ;;  %211 = vset.pattern.permute.xlu0 %v224_v4  ;;  %v26_v45 = vmax.f32 %v182_v38, %v183_v40  ;;  %v92_v50 = vld [vmem:[%s299_s2] sm:$0xff] }
   0x7   :  { %55 = vperm.xlu1 %213, %v28_v2   ;;  %39 = vperm.xlu0 %211, %v28_v2  }
   0x8   :  { %v27_v49 = vmax.f32 %v21_v41, %v26_v45 }
   0xb   :  { %214 = vset.pattern.permute.xlu1 %v225_v5  ;;  %215 = vset.pattern.permute.xlu0 %v226_v6 }
   0xc   :  { %61 = vperm.xlu1 %214, %v28_v2   ;;  %67 = vperm.xlu0 %215, %v28_v2  }
  0x10   :  { %216 = vset.pattern.permute.xlu1 %v227_v7  ;;  %218 = vset.pattern.permute.xlu0 %v228_v8 }
  0x11   :  { %75 = vperm.xlu1 %216, %v28_v2   ;;  %87 = vperm.xlu0 %218, %v28_v2  }
  0x15   :  { %217 = vset.pattern.permute.xlu1 %v229_v9  ;;  %220 = vset.pattern.permute.xlu0 %v222_v1 }
  0x16   :  { %81 = vperm.xlu1 %217, %v28_v2  }
  0x1a   :  { %219 = vset.pattern.permute.xlu1 %v222_v1 }
  0x1b   :  { %96 = vperm.xlu1 %219, %v93_v11  }
  0x7d   :  { %v48_v12 = vpop.permute.xlu1 %47  ;;  %v33_v13 = vpop.permute.xlu0 %32 }
  0x7e   :  { %v35_v19 = vmul.f32 %v33_v13, %v29_v14  ;;  %v50_v22 = vmul.f32 %v185_v16, %v48_v12 }
  0x82   :  { %v56_v17 = vpop.permute.xlu1 %55  ;;  %v40_v18 = vpop.permute.xlu0 %39 }
  0x83   :  { %v42_v20 = vmul.f32 %v184_v15, %v40_v18  ;;  %v58_v25 = vmul.f32 %v186_v21, %v56_v17 }
  0x85   :  { %v43_v23 = vadd.f32 %v42_v20, %v35_v19 }
  0x87   :  { %v51_v26 = vadd.f32 %v50_v22, %v43_v23  ;;  %v62_v27 = vpop.permute.xlu1 %61  ;;  %v68_v28 = vpop.permute.xlu0 %67 }
  0x88   :  { %v64_v30 = vmul.f32 %v180_v24, %v62_v27  ;;  %v70_v32 = vmul.f32 %v181_v29, %v68_v28 }
  0x89   :  { %v59_v31 = vadd.f32 %v58_v25, %v51_v26 }
  0x8b   :  { %v65_v33 = vadd.f32 %v64_v30, %v59_v31 }
  0x8c   :  { %v76_v35 = vpop.permute.xlu1 %75  ;;  %v88_v39 = vpop.permute.xlu0 %87 }
  0x8d   :  { %v71_v36 = vadd.f32 %v70_v32, %v65_v33  ;;  %v78_v37 = vmul.f32 %v187_v34, %v76_v35  ;;  %v90_v46 = vmul.f32 %v183_v40, %v88_v39 }
  0x8f   :  { %v79_v43 = vadd.f32 %v78_v37, %v71_v36 }
  0x91   :  { %v82_v42 = vpop.permute.xlu1 %81 }
  0x92   :  { %v84_v44 = vmul.f32 %v182_v38, %v82_v42 }
  0x94   :  { %v85_v47 = vadd.f32 %v84_v44, %v79_v43 }
  0x96   :  { %v91_v48 = vadd.f32 %v90_v46, %v85_v47  ;;  %v97_v51 = vpop.permute.xlu1 %96 }
  0x98   :  { %193 = vmatpush3.msra.mxu0 %v91_v48 }
  0x99   :  { %194 = vmatprep.subr.mxu0 %v230_v10 }
  0x9a   :  { %195 = vmatpush3.msra.mxu0 %v27_v49 }
  0x9b   :  { %197 = vmatmul.mubr.msk.f32.vlgmr.msra.gmra.mxu0 %vm99_vm1, %v92_v50 }
 0x15b   :  { %v169_v52 = vpop.f32.mrf.mxu0 }
 0x15c   :  { %v170_v53 = vadd.f32 %v169_v52, %v97_v51 }
 0x15d   :  { %v198_v54 = vpop.f32.mrf.mxu0 }
 0x15e   :  { %v173_v55 = vmax.f32 %v170_v53, 0.0 }
 0x160   :  { %175 = vst.msk [vmem:[%s300_s4] sm:$0xff] %vm174_vm2, %v173_v55 }

// kernel: forward.11
= control target key start
LH: loop header
LB: loop body
LE: loop exit
PB: predicated region body
PF: predicated region fallthrough
CT: control target
= control target key end

     0   :  { %v133_v0 = vmov 2   ;;  %v134_v1 = vmov 0   ;;  %v135_v3 = vmov 3   ;;  %v136_v4 = vmov 1   ;;  %s206_s2 = inlined_call_operand.vmem [shape: f32[8,9], index: 2, kind: input, shape index: {}]   ;;  %s207_s3 = inlined_call_operand.vmem [shape: f32[8,1], index: 3, kind: input, shape index: {}]   ;;  %s208_s0 = inlined_call_operand.vmem [shape: f32[9,8,8], index: 0, kind: input, shape index: {}]   ;;  %s209_s1 = inlined_call_operand.vmem [shape: f32[8,8], index: 1, kind: input, shape index: {}]   ;;  %s210_s4 = inlined_call_operand.vmem [shape: f32[8,8], index: 4, kind: output, shape index: {}]  }
   0x1   :  { %124 = vset.pattern.permute.xlu1 %v133_v0  ;;  %122 = vset.pattern.permute.xlu0 %v134_v1  ;;  %v17_v2 = vld [vmem:[%s206_s2] sm:$0xff]  ;;  %v137_v5 = vmov 4   ;;  %v138_v6 = vmov 5   ;;  %v139_v7 = vmov 6   ;;  %v140_v8 = vmov 8   ;;  %v105_v14 = vld [vmem:[%s208_s0 + $0x8] sm:$0xff] }
   0x2   :  { %36 = vperm.xlu1 %124, %v17_v2   ;;  %21 = vperm.xlu0 %122, %v17_v2   ;;  %v141_v9 = vmov 7   ;;  %v89_v10 = vld [vmem:[%s207_s3] sm:$0xff]  ;;  %v106_v15 = vld [vmem:[%s208_s0 + $0x10] sm:$0xff]  ;;  %v107_v20 = vld [vmem:[%s208_s0 + $0x18] sm:$0xff]  ;;  %vm99_vm0 = vcmask 64512  }
   0x3   :  { %v18_v13 = vld [vmem:[%s208_s0] sm:$0xff]  ;;  %v109_v28 = vld [vmem:[%s208_s0 + $0x28] sm:$0xff]  ;;  %v110_v33 = vld [vmem:[%s208_s0 + $0x30] sm:$0xff] }
   0x4   :  { %v108_v23 = vld [vmem:[%s208_s0 + $0x20] sm:$0xff]  ;;  %v111_v37 = vld [vmem:[%s208_s0 + $0x38] sm:$0xff] }
   0x5   :  { %v112_v39 = vld [vmem:[%s208_s0 + $0x40] sm:$0xff] }
   0x6   :  { %125 = vset.pattern.permute.xlu1 %v135_v3  ;;  %123 = vset.pattern.permute.xlu0 %v136_v4  ;;  %v97_v48 = vld [vmem:[%s209_s1] sm:$0xff] }
   0x7   :  { %44 = vperm.xlu1 %125, %v17_v2   ;;  %28 = vperm.xlu0 %123, %v17_v2  }
   0xb   :  { %126 = vset.pattern.permute.xlu1 %v137_v5  ;;  %127 = vset.pattern.permute.xlu0 %v138_v6 }
   0xc   :  { %52 = vperm.xlu1 %126, %v17_v2   ;;  %60 = vperm.xlu0 %127, %v17_v2  }
  0x10   :  { %128 = vset.pattern.permute.xlu1 %v139_v7  ;;  %130 = vset.pattern.permute.xlu0 %v140_v8 }
  0x11   :  { %68 = vperm.xlu1 %128, %v17_v2   ;;  %84 = vperm.xlu0 %130, %v17_v2  }
  0x15   :  { %129 = vset.pattern.permute.xlu1 %v141_v9  ;;  %132 = vset.pattern.permute.xlu0 %v134_v1 }
  0x16   :  { %76 = vperm.xlu1 %129, %v17_v2  }
  0x1a   :  { %131 = vset.pattern.permute.xlu1 %v134_v1 }
  0x1b   :  { %92 = vperm.xlu1 %131, %v89_v10  }
  0x7d   :  { %v37_v11 = vpop.permute.xlu1 %36  ;;  %v22_v12 = vpop.permute.xlu0 %21 }
  0x7e   :  { %v24_v18 = vmul.f32 %v22_v12, %v18_v13  ;;  %v39_v21 = vmul.f32 %v106_v15, %v37_v11 }
  0x82   :  { %v45_v16 = vpop.permute.xlu1 %44  ;;  %v29_v17 = vpop.permute.xlu0 %28 }
  0x83   :  { %v31_v19 = vmul.f32 %v105_v14, %v29_v17  ;;  %v47_v24 = vmul.f32 %v107_v20, %v45_v16 }
  0x85   :  { %v32_v22 = vadd.f32 %v31_v19, %v24_v18 }
  0x87   :  { %v40_v25 = vadd.f32 %v39_v21, %v32_v22  ;;  %v53_v26 = vpop.permute.xlu1 %52  ;;  %v61_v27 = vpop.permute.xlu0 %60 }
  0x88   :  { %v55_v29 = vmul.f32 %v108_v23, %v53_v26  ;;  %v63_v31 = vmul.f32 %v109_v28, %v61_v27 }
  0x89   :  { %v48_v30 = vadd.f32 %v47_v24, %v40_v25 }
  0x8b   :  { %v56_v32 = vadd.f32 %v55_v29, %v48_v30 }
  0x8c   :  { %v69_v34 = vpop.permute.xlu1 %68  ;;  %v85_v38 = vpop.permute.xlu0 %84 }
  0x8d   :  { %v64_v35 = vadd.f32 %v63_v31, %v56_v32  ;;  %v71_v36 = vmul.f32 %v110_v33, %v69_v34  ;;  %v87_v43 = vmul.f32 %v112_v39, %v85_v38 }
  0x8f   :  { %v72_v41 = vadd.f32 %v71_v36, %v64_v35 }
  0x91   :  { %v77_v40 = vpop.permute.xlu1 %76 }
  0x92   :  { %v79_v42 = vmul.f32 %v111_v37, %v77_v40 }
  0x94   :  { %v80_v44 = vadd.f32 %v79_v42, %v72_v41 }
  0x96   :  { %v93_v45 = vpop.permute.xlu1 %92  ;;  %v88_v46 = vadd.f32 %v87_v43, %v80_v44 }
  0x98   :  { %v95_v47 = vadd.f32 %v93_v45, %v88_v46 }
  0x9a   :  { %v96_v49 = vmax.f32 %v95_v47, 0.0 }
  0x9c   :  { %v98_v50 = vadd.f32 %v97_v48, %v96_v49 }
  0x9e   :  { %100 = vst.msk [vmem:[%s210_s4] sm:$0xff] %vm99_vm0, %v98_v50 }

// kernel: forward.12
= control target key start
LH: loop header
LB: loop body
LE: loop exit
PB: predicated region body
PF: predicated region fallthrough
CT: control target
= control target key end

     0   :  { %v133_v0 = vmov 2   ;;  %v134_v1 = vmov 0   ;;  %v135_v3 = vmov 3   ;;  %v136_v4 = vmov 1   ;;  %s206_s2 = inlined_call_operand.vmem [shape: f32[8,9], index: 2, kind: input, shape index: {}]   ;;  %s207_s3 = inlined_call_operand.vmem [shape: f32[8,1], index: 3, kind: input, shape index: {}]   ;;  %s208_s0 = inlined_call_operand.vmem [shape: f32[9,8,32], index: 0, kind: input, shape index: {}]   ;;  %s209_s1 = inlined_call_operand.vmem [shape: f32[8,32], index: 1, kind: input, shape index: {}]   ;;  %s210_s4 = inlined_call_operand.vmem [shape: f32[8,32], index: 4, kind: output, shape index: {}]  }
   0x1   :  { %124 = vset.pattern.permute.xlu1 %v133_v0  ;;  %122 = vset.pattern.permute.xlu0 %v134_v1  ;;  %v17_v2 = vld [vmem:[%s206_s2] sm:$0xff]  ;;  %v137_v5 = vmov 4   ;;  %v138_v6 = vmov 5   ;;  %v139_v7 = vmov 6   ;;  %v140_v8 = vmov 8   ;;  %v105_v14 = vld [vmem:[%s208_s0 + $0x8] sm:$0xff] }
   0x2   :  { %36 = vperm.xlu1 %124, %v17_v2   ;;  %21 = vperm.xlu0 %122, %v17_v2   ;;  %v141_v9 = vmov 7   ;;  %v89_v10 = vld [vmem:[%s207_s3] sm:$0xff]  ;;  %v106_v15 = vld [vmem:[%s208_s0 + $0x10] sm:$0xff]  ;;  %v107_v20 = vld [vmem:[%s208_s0 + $0x18] sm:$0xff]  ;;  %vm99_vm0 = vcmask 261120  }
   0x3   :  { %v18_v13 = vld [vmem:[%s208_s0] sm:$0xff]  ;;  %v109_v28 = vld [vmem:[%s208_s0 + $0x28] sm:$0xff]  ;;  %v110_v33 = vld [vmem:[%s208_s0 + $0x30] sm:$0xff] }
   0x4   :  { %v108_v23 = vld [vmem:[%s208_s0 + $0x20] sm:$0xff]  ;;  %v111_v37 = vld [vmem:[%s208_s0 + $0x38] sm:$0xff] }
   0x5   :  { %v112_v39 = vld [vmem:[%s208_s0 + $0x40] sm:$0xff] }
   0x6   :  { %125 = vset.pattern.permute.xlu1 %v135_v3  ;;  %123 = vset.pattern.permute.xlu0 %v136_v4  ;;  %v97_v48 = vld [vmem:[%s209_s1] sm:$0xff] }
   0x7   :  { %44 = vperm.xlu1 %125, %v17_v2   ;;  %28 = vperm.xlu0 %123, %v17_v2  }
   0xb   :  { %126 = vset.pattern.permute.xlu1 %v137_v5  ;;  %127 = vset.pattern.permute.xlu0 %v138_v6 }
   0xc   :  { %52 = vperm.xlu1 %126, %v17_v2   ;;  %60 = vperm.xlu0 %127, %v17_v2  }
  0x10   :  { %128 = vset.pattern.permute.xlu1 %v139_v7  ;;  %130 = vset.pattern.permute.xlu0 %v140_v8 }
  0x11   :  { %68 = vperm.xlu1 %128, %v17_v2   ;;  %84 = vperm.xlu0 %130, %v17_v2  }
  0x15   :  { %129 = vset.pattern.permute.xlu1 %v141_v9  ;;  %132 = vset.pattern.permute.xlu0 %v134_v1 }
  0x16   :  { %76 = vperm.xlu1 %129, %v17_v2  }
  0x1a   :  { %131 = vset.pattern.permute.xlu1 %v134_v1 }
  0x1b   :  { %92 = vperm.xlu1 %131, %v89_v10  }
  0x7d   :  { %v37_v11 = vpop.permute.xlu1 %36  ;;  %v22_v12 = vpop.permute.xlu0 %21 }
  0x7e   :  { %v24_v18 = vmul.f32 %v22_v12, %v18_v13  ;;  %v39_v21 = vmul.f32 %v106_v15, %v37_v11 }
  0x82   :  { %v45_v16 = vpop.permute.xlu1 %44  ;;  %v29_v17 = vpop.permute.xlu0 %28 }
  0x83   :  { %v31_v19 = vmul.f32 %v105_v14, %v29_v17  ;;  %v47_v24 = vmul.f32 %v107_v20, %v45_v16 }
  0x85   :  { %v32_v22 = vadd.f32 %v31_v19, %v24_v18 }
  0x87   :  { %v40_v25 = vadd.f32 %v39_v21, %v32_v22  ;;  %v53_v26 = vpop.permute.xlu1 %52  ;;  %v61_v27 = vpop.permute.xlu0 %60 }
  0x88   :  { %v55_v29 = vmul.f32 %v108_v23, %v53_v26  ;;  %v63_v31 = vmul.f32 %v109_v28, %v61_v27 }
  0x89   :  { %v48_v30 = vadd.f32 %v47_v24, %v40_v25 }
  0x8b   :  { %v56_v32 = vadd.f32 %v55_v29, %v48_v30 }
  0x8c   :  { %v69_v34 = vpop.permute.xlu1 %68  ;;  %v85_v38 = vpop.permute.xlu0 %84 }
  0x8d   :  { %v64_v35 = vadd.f32 %v63_v31, %v56_v32  ;;  %v71_v36 = vmul.f32 %v110_v33, %v69_v34  ;;  %v87_v43 = vmul.f32 %v112_v39, %v85_v38 }
  0x8f   :  { %v72_v41 = vadd.f32 %v71_v36, %v64_v35 }
  0x91   :  { %v77_v40 = vpop.permute.xlu1 %76 }
  0x92   :  { %v79_v42 = vmul.f32 %v111_v37, %v77_v40 }
  0x94   :  { %v80_v44 = vadd.f32 %v79_v42, %v72_v41 }
  0x96   :  { %v93_v45 = vpop.permute.xlu1 %92  ;;  %v88_v46 = vadd.f32 %v87_v43, %v80_v44 }
  0x98   :  { %v95_v47 = vadd.f32 %v93_v45, %v88_v46 }
  0x9a   :  { %v96_v49 = vmax.f32 %v95_v47, 0.0 }
  0x9c   :  { %v98_v50 = vadd.f32 %v97_v48, %v96_v49 }
  0x9e   :  { %100 = vst.msk [vmem:[%s210_s4] sm:$0xff] %vm99_vm0, %v98_v50 }

// kernel: forward.13
= control target key start
LH: loop header
LB: loop body
LE: loop exit
PB: predicated region body
PF: predicated region fallthrough
CT: control target
= control target key end

     0   :  { %v132_v0 = vmov 2   ;;  %v133_v1 = vmov 0   ;;  %v134_v3 = vmov 3   ;;  %v135_v4 = vmov 1   ;;  %s205_s2 = inlined_call_operand.vmem [shape: f32[8,9], index: 2, kind: input, shape index: {}]   ;;  %s206_s3 = inlined_call_operand.vmem [shape: f32[8,1], index: 3, kind: input, shape index: {}]   ;;  %s207_s0 = inlined_call_operand.vmem [shape: f32[9,8,128], index: 0, kind: input, shape index: {}]   ;;  %s208_s1 = inlined_call_operand.vmem [shape: f32[8,128], index: 1, kind: input, shape index: {}]   ;;  %s209_s4 = inlined_call_operand.vmem [shape: f32[8,128], index: 4, kind: output, shape index: {}]  }
   0x1   :  { %123 = vset.pattern.permute.xlu1 %v132_v0  ;;  %121 = vset.pattern.permute.xlu0 %v133_v1  ;;  %v17_v2 = vld [vmem:[%s205_s2] sm:$0xff]  ;;  %v136_v5 = vmov 4   ;;  %v137_v6 = vmov 5   ;;  %v138_v7 = vmov 6   ;;  %v139_v8 = vmov 8   ;;  %v104_v14 = vld [vmem:[%s207_s0 + $0x8] sm:$0xff] }
   0x2   :  { %36 = vperm.xlu1 %123, %v17_v2   ;;  %21 = vperm.xlu0 %121, %v17_v2   ;;  %v140_v9 = vmov 7   ;;  %v89_v10 = vld [vmem:[%s206_s3] sm:$0xff]  ;;  %v105_v15 = vld [vmem:[%s207_s0 + $0x10] sm:$0xff]  ;;  %v106_v20 = vld [vmem:[%s207_s0 + $0x18] sm:$0xff] }
   0x3   :  { %v18_v13 = vld [vmem:[%s207_s0] sm:$0xff]  ;;  %v108_v28 = vld [vmem:[%s207_s0 + $0x28] sm:$0xff]  ;;  %v109_v33 = vld [vmem:[%s207_s0 + $0x30] sm:$0xff] }
   0x4   :  { %v107_v23 = vld [vmem:[%s207_s0 + $0x20] sm:$0xff]  ;;  %v110_v37 = vld [vmem:[%s207_s0 + $0x38] sm:$0xff] }
   0x5   :  { %v111_v39 = vld [vmem:[%s207_s0 + $0x40] sm:$0xff] }
   0x6   :  { %124 = vset.pattern.permute.xlu1 %v134_v3  ;;  %122 = vset.pattern.permute.xlu0 %v135_v4  ;;  %v97_v48 = vld [vmem:[%s208_s1] sm:$0xff] }
   0x7   :  { %44 = vperm.xlu1 %124, %v17_v2   ;;  %28 = vperm.xlu0 %122, %v17_v2  }
   0xb   :  { %125 = vset.pattern.permute.xlu1 %v136_v5  ;;  %126 = vset.pattern.permute.xlu0 %v137_v6 }
   0xc   :  { %52 = vperm.xlu1 %125, %v17_v2   ;;  %60 = vperm.xlu0 %126, %v17_v2  }
  0x10   :  { %127 = vset.pattern.permute.xlu1 %v138_v7  ;;  %129 = vset.pattern.permute.xlu0 %v139_v8 }
  0x11   :  { %68 = vperm.xlu1 %127, %v17_v2   ;;  %84 = vperm.xlu0 %129, %v17_v2  }
  0x15   :  { %128 = vset.pattern.permute.xlu1 %v140_v9  ;;  %131 = vset.pattern.permute.xlu0 %v133_v1 }
  0x16   :  { %76 = vperm.xlu1 %128, %v17_v2  }
  0x1a   :  { %130 = vset.pattern.permute.xlu1 %v133_v1 }
  0x1b   :  { %92 = vperm.xlu1 %130, %v89_v10  }
  0x7d   :  { %v37_v11 = vpop.permute.xlu1 %36  ;;  %v22_v12 = vpop.permute.xlu0 %21 }
  0x7e   :  { %v24_v18 = vmul.f32 %v22_v12, %v18_v13  ;;  %v39_v21 = vmul.f32 %v105_v15, %v37_v11 }
  0x82   :  { %v45_v16 = vpop.permute.xlu1 %44  ;;  %v29_v17 = vpop.permute.xlu0 %28 }
  0x83   :  { %v31_v19 = vmul.f32 %v104_v14, %v29_v17  ;;  %v47_v24 = vmul.f32 %v106_v20, %v45_v16 }
  0x85   :  { %v32_v22 = vadd.f32 %v31_v19, %v24_v18 }
  0x87   :  { %v40_v25 = vadd.f32 %v39_v21, %v32_v22  ;;  %v53_v26 = vpop.permute.xlu1 %52  ;;  %v61_v27 = vpop.permute.xlu0 %60 }
  0x88   :  { %v55_v29 = vmul.f32 %v107_v23, %v53_v26  ;;  %v63_v31 = vmul.f32 %v108_v28, %v61_v27 }
  0x89   :  { %v48_v30 = vadd.f32 %v47_v24, %v40_v25 }
  0x8b   :  { %v56_v32 = vadd.f32 %v55_v29, %v48_v30 }
  0x8c   :  { %v69_v34 = vpop.permute.xlu1 %68  ;;  %v85_v38 = vpop.permute.xlu0 %84 }
  0x8d   :  { %v64_v35 = vadd.f32 %v63_v31, %v56_v32  ;;  %v71_v36 = vmul.f32 %v109_v33, %v69_v34  ;;  %v87_v43 = vmul.f32 %v111_v39, %v85_v38 }
  0x8f   :  { %v72_v41 = vadd.f32 %v71_v36, %v64_v35 }
  0x91   :  { %v77_v40 = vpop.permute.xlu1 %76 }
  0x92   :  { %v79_v42 = vmul.f32 %v110_v37, %v77_v40 }
  0x94   :  { %v80_v44 = vadd.f32 %v79_v42, %v72_v41 }
  0x96   :  { %v93_v45 = vpop.permute.xlu1 %92  ;;  %v88_v46 = vadd.f32 %v87_v43, %v80_v44 }
  0x98   :  { %v95_v47 = vadd.f32 %v93_v45, %v88_v46 }
  0x9a   :  { %v96_v49 = vmax.f32 %v95_v47, 0.0 }
  0x9c   :  { %v98_v50 = vadd.f32 %v97_v48, %v96_v49 }
  0x9e   :  { %99 = vst [vmem:[%s209_s4] sm:$0xff] %v98_v50 }

</bundles_post_ra>
